<compile_context>
chip_gen: v5e
topology: v5e:2x2
jax: 0.10.0
libtpu: 0.0.40
codegen_flags: <defaults>
</compile_context>

<pallas_src>
import math
from functools import partial

import jax
import jax.numpy as jnp
from jax.experimental import pallas as pl
from jax.experimental.pallas import tpu as pltpu


# ---------------------------- tiling helpers --------------------------------

DEF_TM = 256        # target M tile (rows of activations)
DEF_TN = 512        # target N tile (output features)
DEF_TK = 512        # target K / hidden-chunk tile


def _vmem_limit_bytes():
    """~75% of physical VMEM (64 MiB on v7x, 128 MiB on v5e/v6e), capped."""
    try:
        info = pltpu.get_tpu_info()
        cap = getattr(info, "vmem_capacity_bytes", None)
        if cap:
            return int(min(100 * 2**20, (int(cap) * 3) // 4))
    except Exception:
        pass
    return 64 * 2**20


VMEM_LIMIT = _vmem_limit_bytes()


def _tile_and_pad(n, target):
    """Pick tile = min(n, target); return (tile, n padded to a tile multiple)."""
    if n <= target:
        return n, n
    tile = target
    return tile, ((n + tile - 1) // tile) * tile


def _kv_block_size(max_s):
    """KV block length dividing max_s (prefers >=2 blocks, 8-row aligned)."""
    cap = max(8, max_s // 2)
    for cand in (512, 256, 128, 64, 32, 16, 8):
        if cand <= cap and max_s % cand == 0:
            return cand
    return max_s


# ----------------------------- Pallas kernels -------------------------------

def _rms_matmul_kernel(x_ref, g_ref, w_ref, o_ref, xn_ref, *, eps):
    # Fused RMSNorm + matmul.  Norm is hoisted: computed once per m-tile into
    # the xn scratch (at n == 0 of the inner "arbitrary" axis), reused for all
    # N tiles.  x: (tm, K) bf16, g: (1, K) f32, w: (K, tn) bf16.
    @pl.when(pl.program_id(1) == 0)
    def _():
        x = x_ref[...].astype(jnp.float32)
        ms = jnp.mean(x * x, axis=-1, keepdims=True)
        xn_ref[...] = (x * jax.lax.rsqrt(ms + eps) * g_ref[...]).astype(jnp.bfloat16)

    o_ref[...] = jnp.dot(xn_ref[...], w_ref[...],
                         preferred_element_type=jnp.float32).astype(o_ref.dtype)


def _matmul_kernel(x_ref, w_ref, o_ref, acc_ref):
    # Tiled matmul with K-reduction accumulator.  Operands are already bf16
    # (no per-K-step cast).  x: (tm, tk), w: (tk, tn).
    @pl.when(pl.program_id(2) == 0)
    def _():
        acc_ref[...] = jnp.zeros_like(acc_ref)

    acc_ref[...] += jnp.dot(x_ref[...], w_ref[...],
                            preferred_element_type=jnp.float32)

    @pl.when(pl.program_id(2) == pl.num_programs(2) - 1)
    def _():
        o_ref[...] = acc_ref[...].astype(o_ref.dtype)


def _ffn_kernel(x_ref, g_ref, w1_ref, w3_ref, w2_ref, o_ref, acc_ref, xn_ref,
                *, eps):
    # Fused RMSNorm + SwiGLU FFN, hidden dim chunked along grid axis 1.
    # Norm hoisted to the first hidden chunk; (M, hidden) never materialized.
    @pl.when(pl.program_id(1) == 0)
    def _():
        x = x_ref[...].astype(jnp.float32)
        ms = jnp.mean(x * x, axis=-1, keepdims=True)
        xn_ref[...] = (x * jax.lax.rsqrt(ms + eps) * g_ref[...]).astype(jnp.bfloat16)
        acc_ref[...] = jnp.zeros_like(acc_ref)

    xn = xn_ref[...]
    h1 = jnp.dot(xn, w1_ref[...], preferred_element_type=jnp.float32)
    h3 = jnp.dot(xn, w3_ref[...], preferred_element_type=jnp.float32)
    hc = (jax.nn.silu(h1) * h3).astype(jnp.bfloat16)
    acc_ref[...] += jnp.dot(hc, w2_ref[...], preferred_element_type=jnp.float32)

    @pl.when(pl.program_id(1) == pl.num_programs(1) - 1)
    def _():
        o_ref[...] = acc_ref[...].astype(o_ref.dtype)


def _flash_attn_kernel(sp_ref, q_ref, k_ref, v_ref, o_ref,
                       m_scr, l_scr, acc_scr, *, scale, seqlen, kv_block):
    # Flash-style attention over a fixed max_seq KV window.  One (batch,
    # kv-head) group per (b, g); the n_rep query heads of that KV head are
    # folded into the row dim.  KV blocks stream along grid axis 2 with an
    # online-softmax accumulator; start_pos is a runtime SMEM scalar so decode
    # never recompiles.  q: (R, hd), k/v: (kv_block, hd), all bf16.
    j = pl.program_id(2)
    start_pos = sp_ref[0]

    @pl.when(j == 0)
    def _():
        m_scr[...] = jnp.full_like(m_scr, -1e30)
        l_scr[...] = jnp.zeros_like(l_scr)
        acc_scr[...] = jnp.zeros_like(acc_scr)

    kv_start = j * kv_block

    # Skip KV blocks entirely beyond the last valid cache position.
    @pl.when(kv_start <= start_pos + (seqlen - 1))
    def _():
        q = q_ref[...]
        k = k_ref[...]
        s = jax.lax.dot_general(q, k, (((1,), (1,)), ((), ())),
                                preferred_element_type=jnp.float32) * scale

        rows = jax.lax.broadcasted_iota(jnp.int32, s.shape, 0)
        cols = jax.lax.broadcasted_iota(jnp.int32, s.shape, 1) + kv_start
        qpos = rows % seqlen + start_pos          # absolute query position
        s = jnp.where(cols <= qpos, s, -1e30)     # causal + length mask

        m_prev = m_scr[...]
        m_new = jnp.maximum(m_prev, jnp.max(s, axis=-1, keepdims=True))
        alpha = jnp.exp(m_prev - m_new)
        p = jnp.exp(s - m_new)
        l_scr[...] = alpha * l_scr[...] + jnp.sum(p, axis=-1, keepdims=True)
        acc_scr[...] = alpha * acc_scr[...] + jnp.dot(
            p.astype(jnp.bfloat16), v_ref[...], preferred_element_type=jnp.float32)
        m_scr[...] = m_new

    @pl.when(j == pl.num_programs(2) - 1)
    def _():
        o_ref[...] = (acc_scr[...] *
                      pl.reciprocal(l_scr[...], approx=True)).astype(o_ref.dtype)


# ------------------------------- wrappers ------------------------------------

def rms_matmul(x2d, gamma, w, eps, out_dtype=jnp.bfloat16):
    """Fused RMSNorm(x) @ w.  x2d: (M, K) bf16, gamma: (K,), w: (K, N) bf16."""
    M, K = x2d.shape
    N = w.shape[1]
    tm, Mp = _tile_and_pad(M, DEF_TM)
    tn, Np = _tile_and_pad(N, DEF_TN)
    xp = jnp.pad(x2d, ((0, Mp - M), (0, 0))) if Mp != M else x2d
    wp = jnp.pad(w, ((0, 0), (0, Np - N))) if Np != N else w
    ce = pl.CostEstimate(
        flops=2 * Mp * Np * K + 4 * Mp * K, transcendentals=Mp,
        bytes_accessed=int(Mp * K * 2 + K * Np * 2 + Mp * Np * 2))
    out = pl.pallas_call(
        partial(_rms_matmul_kernel, eps=eps),
        out_shape=jax.ShapeDtypeStruct((Mp, Np), out_dtype),
        grid=(Mp // tm, Np // tn),
        in_specs=[pl.BlockSpec((tm, K), lambda m, n: (m, 0)),
                  pl.BlockSpec((1, K), lambda m, n: (0, 0)),
                  pl.BlockSpec((K, tn), lambda m, n: (0, n))],
        out_specs=pl.BlockSpec((tm, tn), lambda m, n: (m, n)),
        scratch_shapes=[pltpu.VMEM((tm, K), jnp.bfloat16)],
        compiler_params=pltpu.CompilerParams(
            dimension_semantics=("parallel", "arbitrary"),
            vmem_limit_bytes=VMEM_LIMIT),
        cost_estimate=ce,
    )(xp.astype(jnp.bfloat16), gamma.reshape(1, K).astype(jnp.float32), wp)
    if (Mp, Np) != (M, N):
        out = out[:M, :N]
    return out


def matmul(x2d, w, out_dtype=jnp.bfloat16):
    """Tiled x @ w.  x2d: (M, K) bf16, w: (K, N) bf16 -> (M, N) out_dtype."""
    M, K = x2d.shape
    N = w.shape[1]
    tm, Mp = _tile_and_pad(M, DEF_TM)
    tn, Np = _tile_and_pad(N, DEF_TN)
    tk, Kp = _tile_and_pad(K, DEF_TK)
    xp = x2d if (Mp, Kp) == (M, K) else jnp.pad(x2d, ((0, Mp - M), (0, Kp - K)))
    wp = w if (Kp, Np) == (K, N) else jnp.pad(w, ((0, Kp - K), (0, Np - N)))
    ce = pl.CostEstimate(
        flops=2 * Mp * Np * Kp, transcendentals=0,
        bytes_accessed=int(Mp * Kp * 2 + Kp * Np * 2 + Mp * Np * 2))
    out = pl.pallas_call(
        _matmul_kernel,
        out_shape=jax.ShapeDtypeStruct((Mp, Np), out_dtype),
        grid=(Mp // tm, Np // tn, Kp // tk),
        in_specs=[pl.BlockSpec((tm, tk), lambda m, n, k: (m, k)),
                  pl.BlockSpec((tk, tn), lambda m, n, k: (k, n))],
        out_specs=pl.BlockSpec((tm, tn), lambda m, n, k: (m, n)),
        scratch_shapes=[pltpu.VMEM((tm, tn), jnp.float32)],
        compiler_params=pltpu.CompilerParams(
            dimension_semantics=("parallel", "parallel", "arbitrary"),
            vmem_limit_bytes=VMEM_LIMIT),
        cost_estimate=ce,
    )(xp.astype(jnp.bfloat16), wp)
    if (Mp, Np) != (M, N):
        out = out[:M, :N]
    return out


def ffn_fused(x2d, gamma, w1, w3, w2, eps):
    """Fused RMSNorm + SwiGLU FFN: w2(silu(xn@w1) * (xn@w3)), hidden chunked."""
    M, D = x2d.shape
    Fh = w1.shape[1]
    tm, Mp = _tile_and_pad(M, DEF_TM)
    tf, Fp = _tile_and_pad(Fh, DEF_TK)
    xp = jnp.pad(x2d, ((0, Mp - M), (0, 0))) if Mp != M else x2d
    w1p = jnp.pad(w1, ((0, 0), (0, Fp - Fh))) if Fp != Fh else w1
    w3p = jnp.pad(w3, ((0, 0), (0, Fp - Fh))) if Fp != Fh else w3
    w2p = jnp.pad(w2, ((0, Fp - Fh), (0, 0))) if Fp != Fh else w2
    ce = pl.CostEstimate(
        flops=6 * Mp * Fp * D + 8 * Mp * Fp, transcendentals=Mp * Fp,
        bytes_accessed=int(Mp * D * 2 + 3 * D * Fp * 2 + Mp * D * 2))
    out = pl.pallas_call(
        partial(_ffn_kernel, eps=eps),
        out_shape=jax.ShapeDtypeStruct((Mp, D), jnp.bfloat16),
        grid=(Mp // tm, Fp // tf),
        in_specs=[pl.BlockSpec((tm, D), lambda m, f: (m, 0)),
                  pl.BlockSpec((1, D), lambda m, f: (0, 0)),
                  pl.BlockSpec((D, tf), lambda m, f: (0, f)),
                  pl.BlockSpec((D, tf), lambda m, f: (0, f)),
                  pl.BlockSpec((tf, D), lambda m, f: (f, 0))],
        out_specs=pl.BlockSpec((tm, D), lambda m, f: (m, 0)),
        scratch_shapes=[pltpu.VMEM((tm, D), jnp.float32),
                        pltpu.VMEM((tm, D), jnp.bfloat16)],
        compiler_params=pltpu.CompilerParams(
            dimension_semantics=("parallel", "arbitrary"),
            vmem_limit_bytes=VMEM_LIMIT),
        cost_estimate=ce,
    )(xp.astype(jnp.bfloat16), gamma.reshape(1, D).astype(jnp.float32),
      w1p, w3p, w2p)
    if Mp != M:
        out = out[:M]
    return out


def attention_core(q, keys, values, start_pos_arr, *, scale, seqlen):
    """q: (B, Hkv, n_rep*S, hd) bf16; keys/values: (maxB, Hkv, maxS, hd) bf16.

    Returns (B, Hkv, n_rep*S, hd) bf16.  start_pos_arr: (1,) int32 (SMEM).
    """
    B, Hkv, R, hd = q.shape
    maxS = keys.shape[2]
    kv_block = _kv_block_size(maxS)
    n_kv = maxS // kv_block
    q_spec = pl.BlockSpec((None, None, R, hd), lambda b, g, j, sp: (b, g, 0, 0))
    kv_spec = pl.BlockSpec((None, None, kv_block, hd),
                           lambda b, g, j, sp: (b, g, j, 0))
    ce = pl.CostEstimate(
        flops=4 * B * Hkv * R * maxS * hd,
        transcendentals=B * Hkv * R * maxS,
        bytes_accessed=int((q.size + keys.size + values.size + q.size) * 2))
    # TODO(synk): for v7x decode (S==1) fold batch into the M rows of the
    # score/PV GEMMs to fill the 256-row MXU; kept (B, Hkv) grid here.
    return pl.pallas_call(
        partial(_flash_attn_kernel, scale=scale, seqlen=seqlen,
                kv_block=kv_block),
        out_shape=jax.ShapeDtypeStruct((B, Hkv, R, hd), jnp.bfloat16),
        grid_spec=pltpu.PrefetchScalarGridSpec(
            num_scalar_prefetch=1, grid=(B, Hkv, n_kv),
            in_specs=[q_spec, kv_spec, kv_spec],
            out_specs=q_spec,
            scratch_shapes=[pltpu.VMEM((R, 1), jnp.float32),
                            pltpu.VMEM((R, 1), jnp.float32),
                            pltpu.VMEM((R, hd), jnp.float32)]),
        compiler_params=pltpu.CompilerParams(
            dimension_semantics=("parallel", "parallel", "arbitrary"),
            vmem_limit_bytes=VMEM_LIMIT),
        cost_estimate=ce,
    )(start_pos_arr, q, keys, values)


# ------------------------------ RoPE (glue) ----------------------------------
# TODO(synk): RoPE (interleaved even/odd pair convention, matching
# torch.view_as_complex) stays in plain JAX; it is layout plumbing, not a
# hot-path matmul/reduction.

def precompute_freqs_cis(dim, end, theta):
    freqs = 1.0 / (theta ** (jnp.arange(0, dim, 2)[: dim // 2].astype(jnp.float32) / dim))
    t = jnp.arange(end, dtype=jnp.float32)
    angles = jnp.outer(t, freqs)          # (end, dim//2)
    return jnp.cos(angles), jnp.sin(angles)


def apply_rotary_emb(xq, xk, cos, sin):
    # xq: (B, S, H, hd) bf16; pairs (x[2i], x[2i+1]) form a complex number.
    def rot(x):
        xf = x.astype(jnp.float32).reshape(*x.shape[:-1], -1, 2)
        a, b = xf[..., 0], xf[..., 1]
        c = cos[None, :, None, :]
        s = sin[None, :, None, :]
        real = a * c - b * s
        imag = a * s + b * c
        return jnp.stack([real, imag], axis=-1).reshape(x.shape).astype(x.dtype)
    return rot(xq), rot(xk)


# ------------------------------ model setup ----------------------------------

class Args:
    dim = 64
    n_layers = 2
    n_heads = 4
    n_kv_heads = 2
    vocab_size = 128
    multiple_of = 32
    ffn_dim_multiplier = None
    norm_eps = 1e-5
    rope_theta = 500000.0
    max_batch_size = 2
    max_seq_len = 16


def ffn_hidden_dim(args):
    hidden = int(2 * (4 * args.dim) / 3)
    if args.ffn_dim_multiplier is not None:
        hidden = int(args.ffn_dim_multiplier * hidden)
    return args.multiple_of * ((hidden + args.multiple_of - 1) // args.multiple_of)


def init_params(key, args):
    head_dim = args.dim // args.n_heads
    hidden = ffn_hidden_dim(args)
    Hkv = args.n_kv_heads
    n_keys = 2 + args.n_layers * 5
    keys = iter(jax.random.split(key, n_keys))
    scale = 0.02

    def w(k, shape):
        # Weights stored bf16 (halves HBM traffic, full-rate MXU path).
        return (scale * jax.random.normal(k, shape, jnp.float32)).astype(jnp.bfloat16)

    cos_all, sin_all = precompute_freqs_cis(head_dim, args.max_seq_len * 2,
                                            args.rope_theta)
    params = {
        "tok_embeddings": w(next(keys), (args.vocab_size, args.dim)),
        "output": w(next(keys), (args.dim, args.vocab_size)),
        "norm": jnp.ones((args.dim,), jnp.float32),
        "rope_cos": cos_all,
        "rope_sin": sin_all,
        "layers": [],
    }
    for _ in range(args.n_layers):
        params["layers"].append({
            "attn_norm": jnp.ones((args.dim,), jnp.float32),
            "ffn_norm": jnp.ones((args.dim,), jnp.float32),
            # Fused Q|K|V projection weight.
            "wqkv": w(next(keys), (args.dim, (args.n_heads + 2 * Hkv) * head_dim)),
            "wo": w(next(keys), (args.n_heads * head_dim, args.dim)),
            "w1": w(next(keys), (args.dim, hidden)),
            "w3": w(next(keys), (args.dim, hidden)),
            "w2": w(next(keys), (hidden, args.dim)),
        })
    return params


def init_caches(args):
    # Persistent bf16 KV caches, laid out (max_B, Hkv, max_S, hd) so attention
    # reads them without any relayout / repeat.
    head_dim = args.dim // args.n_heads
    shape = (args.max_batch_size, args.n_kv_heads, args.max_seq_len, head_dim)
    return [(jnp.zeros(shape, jnp.bfloat16), jnp.zeros(shape, jnp.bfloat16))
            for _ in range(args.n_layers)]


# ------------------------------ forward pass ---------------------------------

def transformer_block(h, layer, cache_k, cache_v, cos, sin, sp_arr, start_pos,
                      args):
    B, S, D = h.shape
    H = args.n_heads
    Hkv = args.n_kv_heads
    hd = D // H
    n_rep = H // Hkv
    eps = args.norm_eps

    # --- attention (RMSNorm fused into the QKV GEMM) ---
    x2d = h.reshape(B * S, D)
    qkv = rms_matmul(x2d, layer["attn_norm"], layer["wqkv"], eps)
    q_dim, kv_dim = H * hd, Hkv * hd
    xq = qkv[:, :q_dim].reshape(B, S, H, hd)
    xk = qkv[:, q_dim:q_dim + kv_dim].reshape(B, S, Hkv, hd)
    xv = qkv[:, q_dim + kv_dim:].reshape(B, S, Hkv, hd)
    xq, xk = apply_rotary_emb(xq, xk, cos, sin)

    # Persistent KV cache update; under jit with donated caches this lowers to
    # an in-place dynamic-update (no full-cache copy).
    # TODO(synk): a dedicated pallas_call with input_output_aliases would make
    # the in-place write explicit even outside jit.
    xk_t = jnp.transpose(xk, (0, 2, 1, 3)).astype(cache_k.dtype)   # (B,Hkv,S,hd)
    xv_t = jnp.transpose(xv, (0, 2, 1, 3)).astype(cache_v.dtype)
    cache_k = jax.lax.dynamic_update_slice(cache_k, xk_t, (0, 0, start_pos, 0))
    cache_v = jax.lax.dynamic_update_slice(cache_v, xv_t, (0, 0, start_pos, 0))

    # Fold the n_rep query heads of each KV head into the row dimension
    # (GQA replication handled purely by indexing — no jnp.repeat).
    q = jnp.transpose(xq, (0, 2, 1, 3)).reshape(B, Hkv, n_rep * S, hd)

    # Fixed max_seq KV window; validity/causality masked in-kernel via the
    # runtime start_pos scalar (shape-stable across decode steps).
    attn = attention_core(q, cache_k, cache_v, sp_arr,
                          scale=1.0 / math.sqrt(hd), seqlen=S)
    # TODO(synk): emit the attention output directly in (B, S, H*hd) layout
    # (or fuse the wo projection) to drop this relayout; kept as bf16 glue.
    attn = attn.reshape(B, Hkv, n_rep, S, hd)
    attn = jnp.transpose(attn, (0, 3, 1, 2, 4)).reshape(B * S, H * hd)
    attn = matmul(attn, layer["wo"])
    h = h + attn.reshape(B, S, D)

    # --- feed forward (RMSNorm + SwiGLU + w2 fused, hidden chunked) ---
    ff = ffn_fused(h.reshape(B * S, D), layer["ffn_norm"],
                   layer["w1"], layer["w3"], layer["w2"], eps)
    return h + ff.reshape(B, S, D), cache_k, cache_v


def _forward_impl(args, params, caches, tokens, start_pos):
    B, S = tokens.shape
    D = args.dim

    h = jnp.take(params["tok_embeddings"], tokens, axis=0)   # (B, S, D) bf16

    cos = jax.lax.dynamic_slice_in_dim(params["rope_cos"], start_pos, S, axis=0)
    sin = jax.lax.dynamic_slice_in_dim(params["rope_sin"], start_pos, S, axis=0)
    sp_arr = jnp.asarray(start_pos, jnp.int32).reshape(1)

    new_caches = []
    for layer, (ck, cv) in zip(params["layers"], caches):
        h, ck, cv = transformer_block(h, layer, ck, cv, cos, sin, sp_arr,
                                      start_pos, args)
        new_caches.append((ck, cv))

    # Final RMSNorm fused into the output projection (f32 logits).
    logits = rms_matmul(h.reshape(B * S, D), params["norm"], params["output"],
                        args.norm_eps, out_dtype=jnp.float32)
    return logits.reshape(B, S, args.vocab_size), new_caches


# jit: start_pos is a traced int (no per-token recompilation); caches donated
# so the KV writeback happens in place.
transformer_forward = jax.jit(_forward_impl, static_argnums=(0,),
                              donate_argnums=(2,))


# --------------------------------- main ---------------------------------------

if __name__ == "__main__":
    args = Args()
    key = jax.random.PRNGKey(0)
    pkey, tkey = jax.random.split(key)

    params = init_params(pkey, args)
    caches = init_caches(args)

    B, S = 2, 8
    tokens = jax.random.randint(tkey, (B, S), 0, args.vocab_size, dtype=jnp.int32)

    # Prefill (S > 1, causal mask generated in-kernel).
    logits, caches = transformer_forward(args, params, caches, tokens, 0)
    logits = jax.block_until_ready(logits)
    assert logits.shape == (B, S, args.vocab_size)
    assert bool(jnp.all(jnp.isfinite(logits)))

    # One incremental decode step (S == 1 path, persistent KV cache reuse).
    next_tok = jnp.argmax(logits[:, -1, :], axis=-1).astype(jnp.int32)[:, None]
    logits1, caches = transformer_forward(args, params, caches, next_tok, S)
    logits1 = jax.block_until_ready(logits1)
    assert logits1.shape == (B, 1, args.vocab_size)
    assert bool(jnp.all(jnp.isfinite(logits1)))

    print("KERNEL_OK")
</pallas_src>

<mosaic_0001>
module attributes {stable_mosaic.version = 11 : i64} {
  func.func @_rms_matmul_kernel(%arg0: i32, %arg1: i32, %arg2: memref<16x64xbf16, #tpu.memory_space<vmem>>, %arg3: memref<1x64xf32, #tpu.memory_space<vmem>>, %arg4: memref<64x128xbf16, #tpu.memory_space<vmem>>, %arg5: memref<16x128xbf16, #tpu.memory_space<vmem>>, %arg6: memref<16x64xbf16, #tpu.memory_space<vmem>>) attributes {dimension_semantics = [#tpu.dimension_semantics<parallel>, #tpu.dimension_semantics<arbitrary>], iteration_bounds = array<i64: 1, 1>, scalar_prefetch = 0 : i64, scratch_operands = 1 : i64, tpu.core_type = #tpu.core_type<tc>, window_params = [{transform_indices = @transform_0, window_bounds = array<i64: 16, 64>}, {pipeline_mode = #tpu.pipeline_mode<synchronous>, transform_indices = @transform_1, window_bounds = array<i64: 1, 64>}, {transform_indices = @transform_2, window_bounds = array<i64: 64, 128>}, {transform_indices = @transform_3, window_bounds = array<i64: 16, 128>}]} {
    %c0_i32 = arith.constant 0 : i32
    %0 = arith.cmpi eq, %arg1, %c0_i32 : i32
    %1 = arith.extui %0 : i1 to i32
    %c0_i32_0 = arith.constant 0 : i32
    %2 = arith.cmpi ne, %1, %c0_i32_0 : i32
    scf.if %2 {
      %c0_6 = arith.constant 0 : index
      %c0_7 = arith.constant 0 : index
      %8 = vector.load %arg2[%c0_6, %c0_7] : memref<16x64xbf16, #tpu.memory_space<vmem>>, vector<16x64xbf16>
      %9 = arith.extf %8 : vector<16x64xbf16> to vector<16x64xf32>
      %10 = arith.mulf %9, %9 : vector<16x64xf32>
      %cst_8 = arith.constant dense<0.000000e+00> : vector<16xf32>
      %11 = vector.multi_reduction <add>, %10, %cst_8 [1] : vector<16x64xf32> to vector<16xf32>
      %12 = vector.shape_cast %11 : vector<16xf32> to vector<16x1xf32>
      %cst_9 = arith.constant 6.400000e+01 : f32
      %13 = vector.broadcast %cst_9 : f32 to vector<16x1xf32>
      %14 = arith.divf %12, %13 : vector<16x1xf32>
      %cst_10 = arith.constant 9.99999974E-6 : f32
      %15 = vector.broadcast %cst_10 : f32 to vector<16x1xf32>
      %16 = arith.addf %14, %15 : vector<16x1xf32>
      %17 = math.rsqrt %16 : vector<16x1xf32>
      %18 = vector.broadcast %17 : vector<16x1xf32> to vector<16x64xf32>
      %19 = arith.mulf %9, %18 : vector<16x64xf32>
      %c0_11 = arith.constant 0 : index
      %c0_12 = arith.constant 0 : index
      %20 = vector.load %arg3[%c0_11, %c0_12] : memref<1x64xf32, #tpu.memory_space<vmem>>, vector<1x64xf32>
      %21 = vector.broadcast %20 : vector<1x64xf32> to vector<16x64xf32>
      %22 = arith.mulf %19, %21 : vector<16x64xf32>
      %23 = arith.truncf %22 : vector<16x64xf32> to vector<16x64xbf16>
      %c0_13 = arith.constant 0 : index
      %c0_14 = arith.constant 0 : index
      %24 = vector.load %arg6[%c0_13, %c0_14] : memref<16x64xbf16, #tpu.memory_space<vmem>>, vector<16x64xbf16>
      tpu.vector_store %arg6[%c0_13, %c0_14], %23 {strides = array<i32>} : memref<16x64xbf16, #tpu.memory_space<vmem>>, vector<16x64xbf16>,
    } else {
    }
    %c0 = arith.constant 0 : index
    %c0_1 = arith.constant 0 : index
    %3 = vector.load %arg6[%c0, %c0_1] : memref<16x64xbf16, #tpu.memory_space<vmem>>, vector<16x64xbf16>
    %c0_2 = arith.constant 0 : index
    %c0_3 = arith.constant 0 : index
    %4 = vector.load %arg4[%c0_2, %c0_3] : memref<64x128xbf16, #tpu.memory_space<vmem>>, vector<64x128xbf16>
    %cst = arith.constant dense<0.000000e+00> : vector<16x128xf32>
    %5 = tpu.matmul %3, %4, %cst {dimension_numbers = #tpu.dot_dimension_numbers<[1], [0], [0], [1], [0, 0, 1, 1], [], []>} : vector<16x64xbf16>, vector<64x128xbf16>, vector<16x128xf32> -> vector<16x128xf32>
    %6 = arith.truncf %5 : vector<16x128xf32> to vector<16x128xbf16>
    %c0_4 = arith.constant 0 : index
    %c0_5 = arith.constant 0 : index
    %7 = vector.load %arg5[%c0_4, %c0_5] : memref<16x128xbf16, #tpu.memory_space<vmem>>, vector<16x128xbf16>
    tpu.vector_store %arg5[%c0_4, %c0_5], %6 {strides = array<i32>} : memref<16x128xbf16, #tpu.memory_space<vmem>>, vector<16x128xbf16>,
    return
  }
  func.func @transform_0(%arg0: i32, %arg1: i32) -> (i32, i32) {
    %c0_i32 = arith.constant 0 : i32
    %c0_i32_0 = arith.constant 0 : i32
    return %arg0, %c0_i32 : i32, i32
  }
  func.func @transform_1(%arg0: i32, %arg1: i32) -> (i32, i32) {
    %c0_i32 = arith.constant 0 : i32
    %c0_i32_0 = arith.constant 0 : i32
    %c0_i32_1 = arith.constant 0 : i32
    return %c0_i32, %c0_i32_0 : i32, i32
  }
  func.func @transform_2(%arg0: i32, %arg1: i32) -> (i32, i32) {
    %c0_i32 = arith.constant 0 : i32
    %c0_i32_0 = arith.constant 0 : i32
    return %c0_i32, %arg1 : i32, i32
  }
  func.func @transform_3(%arg0: i32, %arg1: i32) -> (i32, i32) {
    %c0_i32 = arith.constant 0 : i32
    return %arg0, %arg1 : i32, i32
  }
}

module attributes {stable_mosaic.version = 11 : i64} {
  func.func @_flash_attn_kernel(%arg0: i32, %arg1: i32, %arg2: i32, %arg3: memref<1xi32, #tpu.memory_space<smem>>, %arg4: memref<1x1x16x16xbf16, #tpu.memory_space<vmem>>, %arg5: memref<1x1x8x16xbf16, #tpu.memory_space<vmem>>, %arg6: memref<1x1x8x16xbf16, #tpu.memory_space<vmem>>, %arg7: memref<1x1x16x16xbf16, #tpu.memory_space<vmem>>, %arg8: memref<16x1xf32, #tpu.memory_space<vmem>>, %arg9: memref<16x1xf32, #tpu.memory_space<vmem>>, %arg10: memref<16x16xf32, #tpu.memory_space<vmem>>) attributes {dimension_semantics = [#tpu.dimension_semantics<parallel>, #tpu.dimension_semantics<parallel>, #tpu.dimension_semantics<arbitrary>], iteration_bounds = array<i64: 2, 2, 2>, scalar_prefetch = 1 : i64, scratch_operands = 3 : i64, tpu.core_type = #tpu.core_type<tc>, window_params = [{transform_indices = @transform_0, window_bounds = array<i64: 1, 1, 16, 16>}, {transform_indices = @transform_1, window_bounds = array<i64: 1, 1, 8, 16>}, {transform_indices = @transform_2, window_bounds = array<i64: 1, 1, 8, 16>}, {transform_indices = @transform_3, window_bounds = array<i64: 1, 1, 16, 16>}]} {
    %c0 = arith.constant 0 : index
    %0 = memref.load %arg3[%c0] : memref<1xi32, #tpu.memory_space<smem>>
    %c0_i32 = arith.constant 0 : i32
    %1 = arith.cmpi eq, %arg2, %c0_i32 : i32
    %2 = arith.extui %1 : i1 to i32
    %c0_i32_0 = arith.constant 0 : i32
    %3 = arith.cmpi ne, %2, %c0_i32_0 : i32
    scf.if %3 {
      %cst = arith.constant -1.000000e+30 : f32
      %12 = vector.broadcast %cst : f32 to vector<16x1xf32>
      %c0_3 = arith.constant 0 : index
      %c0_4 = arith.constant 0 : index
      %13 = vector.load %arg8[%c0_3, %c0_4] : memref<16x1xf32, #tpu.memory_space<vmem>>, vector<16x1xf32>
      tpu.vector_store %arg8[%c0_3, %c0_4], %12 {strides = array<i32>} : memref<16x1xf32, #tpu.memory_space<vmem>>, vector<16x1xf32>,
      %cst_5 = arith.constant 0.000000e+00 : f32
      %14 = vector.broadcast %cst_5 : f32 to vector<16x1xf32>
      %c0_6 = arith.constant 0 : index
      %c0_7 = arith.constant 0 : index
      %15 = vector.load %arg9[%c0_6, %c0_7] : memref<16x1xf32, #tpu.memory_space<vmem>>, vector<16x1xf32>
      tpu.vector_store %arg9[%c0_6, %c0_7], %14 {strides = array<i32>} : memref<16x1xf32, #tpu.memory_space<vmem>>, vector<16x1xf32>,
      %cst_8 = arith.constant 0.000000e+00 : f32
      %16 = vector.broadcast %cst_8 : f32 to vector<16x16xf32>
      %c0_9 = arith.constant 0 : index
      %c0_10 = arith.constant 0 : index
      %17 = vector.load %arg10[%c0_9, %c0_10] : memref<16x16xf32, #tpu.memory_space<vmem>>, vector<16x16xf32>
      tpu.vector_store %arg10[%c0_9, %c0_10], %16 {strides = array<i32>} : memref<16x16xf32, #tpu.memory_space<vmem>>, vector<16x16xf32>,
    } else {
    }
    %c8_i32 = arith.constant 8 : i32
    %4 = arith.muli %arg2, %c8_i32 : i32
    %c7_i32 = arith.constant 7 : i32
    %5 = arith.addi %0, %c7_i32 : i32
    %6 = arith.cmpi sle, %4, %5 : i32
    %7 = arith.extui %6 : i1 to i32
    %c0_i32_1 = arith.constant 0 : i32
    %8 = arith.cmpi ne, %7, %c0_i32_1 : i32
    scf.if %8 {
      %c0_3 = arith.constant 0 : index
      %c0_4 = arith.constant 0 : index
      %c0_5 = arith.constant 0 : index
      %c0_6 = arith.constant 0 : index
      %12 = vector.load %arg4[%c0_3, %c0_4, %c0_5, %c0_6] : memref<1x1x16x16xbf16, #tpu.memory_space<vmem>>, vector<1x1x16x16xbf16>
      %13 = vector.shape_cast %12 : vector<1x1x16x16xbf16> to vector<16x16xbf16>
      %c0_7 = arith.constant 0 : index
      %c0_8 = arith.constant 0 : index
      %c0_9 = arith.constant 0 : index
      %c0_10 = arith.constant 0 : index
      %14 = vector.load %arg5[%c0_7, %c0_8, %c0_9, %c0_10] : memref<1x1x8x16xbf16, #tpu.memory_space<vmem>>, vector<1x1x8x16xbf16>
      %15 = vector.shape_cast %14 : vector<1x1x8x16xbf16> to vector<8x16xbf16>
      %cst = arith.constant dense<0.000000e+00> : vector<16x8xf32>
      %16 = tpu.matmul %13, %15, %cst {dimension_numbers = #tpu.dot_dimension_numbers<[1], [1], [0], [0], [0, 0, 1, 0], [], []>} : vector<16x16xbf16>, vector<8x16xbf16>, vector<16x8xf32> -> vector<16x8xf32>
      %cst_11 = arith.constant 2.500000e-01 : f32
      %17 = vector.broadcast %cst_11 : f32 to vector<16x8xf32>
      %18 = arith.mulf %16, %17 : vector<16x8xf32>
      %19 = tpu.iota {dimensions = array<i32: 0>} : vector<16x8xi32>
      %20 = tpu.iota {dimensions = array<i32: 1>} : vector<16x8xi32>
      %21 = vector.broadcast %4 : i32 to vector<16x8xi32>
      %22 = arith.addi %20, %21 : vector<16x8xi32>
      %c8_i32_12 = arith.constant 8 : i32
      %c0_i32_13 = arith.constant 0 : i32
      %23 = arith.cmpi eq, %c8_i32_12, %c0_i32_13 : i32
      %c1_i32_14 = arith.constant 1 : i32
      %24 = arith.select %23, %c1_i32_14, %c8_i32_12 : i32
      %25 = vector.broadcast %24 : i32 to vector<16x8xi32>
      %26 = arith.remsi %19, %25 : vector<16x8xi32>
      %c0_i32_15 = arith.constant 0 : i32
      %27 = vector.broadcast %c0_i32_15 : i32 to vector<16x8xi32>
      %28 = arith.cmpi ne, %26, %27 : vector<16x8xi32>
      %c0_i32_16 = arith.constant 0 : i32
      %29 = vector.broadcast %c0_i32_16 : i32 to vector<16x8xi32>
      %30 = arith.cmpi slt, %26, %29 : vector<16x8xi32>
      %c0_i32_17 = arith.constant 0 : i32
      %31 = arith.cmpi slt, %24, %c0_i32_17 : i32
      %32 = vector.broadcast %31 : i1 to vector<16x8xi1>
      %33 = vector.broadcast %32 : vector<16x8xi1> to vector<16x8xi1>
      %34 = arith.xori %30, %33 : vector<16x8xi1>
      %35 = arith.andi %34, %28 : vector<16x8xi1>
      %36 = vector.broadcast %24 : i32 to vector<16x8xi32>
      %37 = arith.addi %26, %36 : vector<16x8xi32>
      %38 = arith.select %35, %37, %26 : vector<16x8xi1>, vector<16x8xi32>
      %39 = vector.broadcast %0 : i32 to vector<16x8xi32>
      %40 = arith.addi %38, %39 : vector<16x8xi32>
      %41 = arith.cmpi sle, %22, %40 : vector<16x8xi32>
      %cst_18 = arith.constant -1.000000e+30 : f32
      %42 = vector.broadcast %cst_18 : f32 to vector<16x8xf32>
      %43 = arith.select %41, %18, %42 : vector<16x8xi1>, vector<16x8xf32>
      %c0_19 = arith.constant 0 : index
      %c0_20 = arith.constant 0 : index
      %44 = vector.load %arg8[%c0_19, %c0_20] : memref<16x1xf32, #tpu.memory_space<vmem>>, vector<16x1xf32>
      %cst_21 = arith.constant dense<0xFF800000> : vector<16xf32>
      %45 = vector.multi_reduction <maximumf>, %43, %cst_21 [1] : vector<16x8xf32> to vector<16xf32>
      %46 = vector.shape_cast %45 : vector<16xf32> to vector<16x1xf32>
      %47 = arith.maximumf %44, %46 : vector<16x1xf32>
      %48 = arith.subf %44, %47 : vector<16x1xf32>
      %49 = math.exp %48 : vector<16x1xf32>
      %50 = vector.broadcast %47 : vector<16x1xf32> to vector<16x8xf32>
      %51 = arith.subf %43, %50 : vector<16x8xf32>
      %52 = math.exp %51 : vector<16x8xf32>
      %c0_22 = arith.constant 0 : index
      %c0_23 = arith.constant 0 : index
      %53 = vector.load %arg9[%c0_22, %c0_23] : memref<16x1xf32, #tpu.memory_space<vmem>>, vector<16x1xf32>
      %54 = arith.mulf %49, %53 : vector<16x1xf32>
      %cst_24 = arith.constant dense<0.000000e+00> : vector<16xf32>
      %55 = vector.multi_reduction <add>, %52, %cst_24 [1] : vector<16x8xf32> to vector<16xf32>
      %56 = vector.shape_cast %55 : vector<16xf32> to vector<16x1xf32>
      %57 = arith.addf %54, %56 : vector<16x1xf32>
      %c0_25 = arith.constant 0 : index
      %c0_26 = arith.constant 0 : index
      %58 = vector.load %arg9[%c0_25, %c0_26] : memref<16x1xf32, #tpu.memory_space<vmem>>, vector<16x1xf32>
      tpu.vector_store %arg9[%c0_25, %c0_26], %57 {strides = array<i32>} : memref<16x1xf32, #tpu.memory_space<vmem>>, vector<16x1xf32>,
      %c0_27 = arith.constant 0 : index
      %c0_28 = arith.constant 0 : index
      %59 = vector.load %arg10[%c0_27, %c0_28] : memref<16x16xf32, #tpu.memory_space<vmem>>, vector<16x16xf32>
      %60 = vector.broadcast %49 : vector<16x1xf32> to vector<16x16xf32>
      %61 = arith.mulf %60, %59 : vector<16x16xf32>
      %62 = arith.truncf %52 : vector<16x8xf32> to vector<16x8xbf16>
      %c0_29 = arith.constant 0 : index
      %c0_30 = arith.constant 0 : index
      %c0_31 = arith.constant 0 : index
      %c0_32 = arith.constant 0 : index
      %63 = vector.load %arg6[%c0_29, %c0_30, %c0_31, %c0_32] : memref<1x1x8x16xbf16, #tpu.memory_space<vmem>>, vector<1x1x8x16xbf16>
      %64 = vector.shape_cast %63 : vector<1x1x8x16xbf16> to vector<8x16xbf16>
      %cst_33 = arith.constant dense<0.000000e+00> : vector<16x16xf32>
      %65 = tpu.matmul %62, %64, %cst_33 {dimension_numbers = #tpu.dot_dimension_numbers<[1], [0], [0], [1], [0, 0, 1, 1], [], []>} : vector<16x8xbf16>, vector<8x16xbf16>, vector<16x16xf32> -> vector<16x16xf32>
      %66 = arith.addf %61, %65 : vector<16x16xf32>
      %c0_34 = arith.constant 0 : index
      %c0_35 = arith.constant 0 : index
      %67 = vector.load %arg10[%c0_34, %c0_35] : memref<16x16xf32, #tpu.memory_space<vmem>>, vector<16x16xf32>
      tpu.vector_store %arg10[%c0_34, %c0_35], %66 {strides = array<i32>} : memref<16x16xf32, #tpu.memory_space<vmem>>, vector<16x16xf32>,
      %c0_36 = arith.constant 0 : index
      %c0_37 = arith.constant 0 : index
      %68 = vector.load %arg8[%c0_36, %c0_37] : memref<16x1xf32, #tpu.memory_space<vmem>>, vector<16x1xf32>
      tpu.vector_store %arg8[%c0_36, %c0_37], %47 {strides = array<i32>} : memref<16x1xf32, #tpu.memory_space<vmem>>, vector<16x1xf32>,
    } else {
    }
    %c1_i32 = arith.constant 1 : i32
    %9 = arith.cmpi eq, %arg2, %c1_i32 : i32
    %10 = arith.extui %9 : i1 to i32
    %c0_i32_2 = arith.constant 0 : i32
    %11 = arith.cmpi ne, %10, %c0_i32_2 : i32
    scf.if %11 {
      %c0_3 = arith.constant 0 : index
      %c0_4 = arith.constant 0 : index
      %12 = vector.load %arg10[%c0_3, %c0_4] : memref<16x16xf32, #tpu.memory_space<vmem>>, vector<16x16xf32>
      %c0_5 = arith.constant 0 : index
      %c0_6 = arith.constant 0 : index
      %13 = vector.load %arg9[%c0_5, %c0_6] : memref<16x1xf32, #tpu.memory_space<vmem>>, vector<16x1xf32>
      %14 = tpu.reciprocal %13 {approx = true} : vector<16x1xf32> -> vector<16x1xf32>
      %15 = vector.broadcast %14 : vector<16x1xf32> to vector<16x16xf32>
      %16 = arith.mulf %12, %15 : vector<16x16xf32>
      %17 = arith.truncf %16 : vector<16x16xf32> to vector<16x16xbf16>
      %c0_7 = arith.constant 0 : index
      %c0_8 = arith.constant 0 : index
      %c0_9 = arith.constant 0 : index
      %c0_10 = arith.constant 0 : index
      %18 = vector.load %arg7[%c0_7, %c0_8, %c0_9, %c0_10] : memref<1x1x16x16xbf16, #tpu.memory_space<vmem>>, vector<1x1x16x16xbf16>
      %19 = vector.shape_cast %18 : vector<1x1x16x16xbf16> to vector<16x16xbf16>
      %20 = vector.shape_cast %17 : vector<16x16xbf16> to vector<1x1x16x16xbf16>
      tpu.vector_store %arg7[%c0_7, %c0_8, %c0_9, %c0_10], %20 {strides = array<i32>} : memref<1x1x16x16xbf16, #tpu.memory_space<vmem>>, vector<1x1x16x16xbf16>,
    } else {
    }
    return
  }
  func.func @transform_0(%arg0: i32, %arg1: i32, %arg2: i32, %arg3: memref<1xi32, #tpu.memory_space<smem>>) -> (i32, i32, i32, i32) {
    %c0_i32 = arith.constant 0 : i32
    %c0_i32_0 = arith.constant 0 : i32
    %c0_i32_1 = arith.constant 0 : i32
    return %arg0, %arg1, %c0_i32, %c0_i32_0 : i32, i32, i32, i32
  }
  func.func @transform_1(%arg0: i32, %arg1: i32, %arg2: i32, %arg3: memref<1xi32, #tpu.memory_space<smem>>) -> (i32, i32, i32, i32) {
    %c0_i32 = arith.constant 0 : i32
    %c0_i32_0 = arith.constant 0 : i32
    return %arg0, %arg1, %arg2, %c0_i32 : i32, i32, i32, i32
  }
  func.func @transform_2(%arg0: i32, %arg1: i32, %arg2: i32, %arg3: memref<1xi32, #tpu.memory_space<smem>>) -> (i32, i32, i32, i32) {
    %c0_i32 = arith.constant 0 : i32
    %c0_i32_0 = arith.constant 0 : i32
    return %arg0, %arg1, %arg2, %c0_i32 : i32, i32, i32, i32
  }
  func.func @transform_3(%arg0: i32, %arg1: i32, %arg2: i32, %arg3: memref<1xi32, #tpu.memory_space<smem>>) -> (i32, i32, i32, i32) {
    %c0_i32 = arith.constant 0 : i32
    %c0_i32_0 = arith.constant 0 : i32
    %c0_i32_1 = arith.constant 0 : i32
    return %arg0, %arg1, %c0_i32, %c0_i32_0 : i32, i32, i32, i32
  }
}

module attributes {stable_mosaic.version = 11 : i64} {
  func.func @_ffn_kernel(%arg0: i32, %arg1: i32, %arg2: memref<16x64xbf16, #tpu.memory_space<vmem>>, %arg3: memref<1x64xf32, #tpu.memory_space<vmem>>, %arg4: memref<64x192xbf16, #tpu.memory_space<vmem>>, %arg5: memref<64x192xbf16, #tpu.memory_space<vmem>>, %arg6: memref<192x64xbf16, #tpu.memory_space<vmem>>, %arg7: memref<16x64xbf16, #tpu.memory_space<vmem>>, %arg8: memref<16x64xf32, #tpu.memory_space<vmem>>, %arg9: memref<16x64xbf16, #tpu.memory_space<vmem>>) attributes {dimension_semantics = [#tpu.dimension_semantics<parallel>, #tpu.dimension_semantics<arbitrary>], iteration_bounds = array<i64: 1, 1>, scalar_prefetch = 0 : i64, scratch_operands = 2 : i64, tpu.core_type = #tpu.core_type<tc>, window_params = [{transform_indices = @transform_0, window_bounds = array<i64: 16, 64>}, {pipeline_mode = #tpu.pipeline_mode<synchronous>, transform_indices = @transform_1, window_bounds = array<i64: 1, 64>}, {transform_indices = @transform_2, window_bounds = array<i64: 64, 192>}, {transform_indices = @transform_3, window_bounds = array<i64: 64, 192>}, {transform_indices = @transform_4, window_bounds = array<i64: 192, 64>}, {transform_indices = @transform_5, window_bounds = array<i64: 16, 64>}]} {
    %c0_i32 = arith.constant 0 : i32
    %0 = arith.cmpi eq, %arg1, %c0_i32 : i32
    %1 = arith.extui %0 : i1 to i32
    %c0_i32_0 = arith.constant 0 : i32
    %2 = arith.cmpi ne, %1, %c0_i32_0 : i32
    scf.if %2 {
      %c0_17 = arith.constant 0 : index
      %c0_18 = arith.constant 0 : index
      %24 = vector.load %arg2[%c0_17, %c0_18] : memref<16x64xbf16, #tpu.memory_space<vmem>>, vector<16x64xbf16>
      %25 = arith.extf %24 : vector<16x64xbf16> to vector<16x64xf32>
      %26 = arith.mulf %25, %25 : vector<16x64xf32>
      %cst_19 = arith.constant dense<0.000000e+00> : vector<16xf32>
      %27 = vector.multi_reduction <add>, %26, %cst_19 [1] : vector<16x64xf32> to vector<16xf32>
      %28 = vector.shape_cast %27 : vector<16xf32> to vector<16x1xf32>
      %cst_20 = arith.constant 6.400000e+01 : f32
      %29 = vector.broadcast %cst_20 : f32 to vector<16x1xf32>
      %30 = arith.divf %28, %29 : vector<16x1xf32>
      %cst_21 = arith.constant 9.99999974E-6 : f32
      %31 = vector.broadcast %cst_21 : f32 to vector<16x1xf32>
      %32 = arith.addf %30, %31 : vector<16x1xf32>
      %33 = math.rsqrt %32 : vector<16x1xf32>
      %34 = vector.broadcast %33 : vector<16x1xf32> to vector<16x64xf32>
      %35 = arith.mulf %25, %34 : vector<16x64xf32>
      %c0_22 = arith.constant 0 : index
      %c0_23 = arith.constant 0 : index
      %36 = vector.load %arg3[%c0_22, %c0_23] : memref<1x64xf32, #tpu.memory_space<vmem>>, vector<1x64xf32>
      %37 = vector.broadcast %36 : vector<1x64xf32> to vector<16x64xf32>
      %38 = arith.mulf %35, %37 : vector<16x64xf32>
      %39 = arith.truncf %38 : vector<16x64xf32> to vector<16x64xbf16>
      %c0_24 = arith.constant 0 : index
      %c0_25 = arith.constant 0 : index
      %40 = vector.load %arg9[%c0_24, %c0_25] : memref<16x64xbf16, #tpu.memory_space<vmem>>, vector<16x64xbf16>
      tpu.vector_store %arg9[%c0_24, %c0_25], %39 {strides = array<i32>} : memref<16x64xbf16, #tpu.memory_space<vmem>>, vector<16x64xbf16>,
      %cst_26 = arith.constant 0.000000e+00 : f32
      %41 = vector.broadcast %cst_26 : f32 to vector<16x64xf32>
      %c0_27 = arith.constant 0 : index
      %c0_28 = arith.constant 0 : index
      %42 = vector.load %arg8[%c0_27, %c0_28] : memref<16x64xf32, #tpu.memory_space<vmem>>, vector<16x64xf32>
      tpu.vector_store %arg8[%c0_27, %c0_28], %41 {strides = array<i32>} : memref<16x64xf32, #tpu.memory_space<vmem>>, vector<16x64xf32>,
    } else {
    }
    %c0 = arith.constant 0 : index
    %c0_1 = arith.constant 0 : index
    %3 = vector.load %arg9[%c0, %c0_1] : memref<16x64xbf16, #tpu.memory_space<vmem>>, vector<16x64xbf16>
    %c0_2 = arith.constant 0 : index
    %c0_3 = arith.constant 0 : index
    %4 = vector.load %arg4[%c0_2, %c0_3] : memref<64x192xbf16, #tpu.memory_space<vmem>>, vector<64x192xbf16>
    %cst = arith.constant dense<0.000000e+00> : vector<16x192xf32>
    %5 = tpu.matmul %3, %4, %cst {dimension_numbers = #tpu.dot_dimension_numbers<[1], [0], [0], [1], [0, 0, 1, 1], [], []>} : vector<16x64xbf16>, vector<64x192xbf16>, vector<16x192xf32> -> vector<16x192xf32>
    %c0_4 = arith.constant 0 : index
    %c0_5 = arith.constant 0 : index
    %6 = vector.load %arg5[%c0_4, %c0_5] : memref<64x192xbf16, #tpu.memory_space<vmem>>, vector<64x192xbf16>
    %cst_6 = arith.constant dense<0.000000e+00> : vector<16x192xf32>
    %7 = tpu.matmul %3, %6, %cst_6 {dimension_numbers = #tpu.dot_dimension_numbers<[1], [0], [0], [1], [0, 0, 1, 1], [], []>} : vector<16x64xbf16>, vector<64x192xbf16>, vector<16x192xf32> -> vector<16x192xf32>
    %8 = arith.negf %5 : vector<16x192xf32>
    %9 = math.exp %8 : vector<16x192xf32>
    %cst_7 = arith.constant 1.000000e+00 : f32
    %10 = vector.broadcast %cst_7 : f32 to vector<16x192xf32>
    %11 = arith.addf %10, %9 : vector<16x192xf32>
    %12 = arith.divf %10, %11 : vector<16x192xf32>
    %13 = arith.mulf %5, %12 : vector<16x192xf32>
    %14 = arith.mulf %13, %7 : vector<16x192xf32>
    %15 = arith.truncf %14 : vector<16x192xf32> to vector<16x192xbf16>
    %c0_8 = arith.constant 0 : index
    %c0_9 = arith.constant 0 : index
    %16 = vector.load %arg8[%c0_8, %c0_9] : memref<16x64xf32, #tpu.memory_space<vmem>>, vector<16x64xf32>
    %c0_10 = arith.constant 0 : index
    %c0_11 = arith.constant 0 : index
    %17 = vector.load %arg6[%c0_10, %c0_11] : memref<192x64xbf16, #tpu.memory_space<vmem>>, vector<192x64xbf16>
    %cst_12 = arith.constant dense<0.000000e+00> : vector<16x64xf32>
    %18 = tpu.matmul %15, %17, %cst_12 {dimension_numbers = #tpu.dot_dimension_numbers<[1], [0], [0], [1], [0, 0, 1, 1], [], []>} : vector<16x192xbf16>, vector<192x64xbf16>, vector<16x64xf32> -> vector<16x64xf32>
    %19 = arith.addf %16, %18 : vector<16x64xf32>
    %c0_13 = arith.constant 0 : index
    %c0_14 = arith.constant 0 : index
    %20 = vector.load %arg8[%c0_13, %c0_14] : memref<16x64xf32, #tpu.memory_space<vmem>>, vector<16x64xf32>
    tpu.vector_store %arg8[%c0_13, %c0_14], %19 {strides = array<i32>} : memref<16x64xf32, #tpu.memory_space<vmem>>, vector<16x64xf32>,
    %c0_i32_15 = arith.constant 0 : i32
    %21 = arith.cmpi eq, %arg1, %c0_i32_15 : i32
    %22 = arith.extui %21 : i1 to i32
    %c0_i32_16 = arith.constant 0 : i32
    %23 = arith.cmpi ne, %22, %c0_i32_16 : i32
    scf.if %23 {
      %c0_17 = arith.constant 0 : index
      %c0_18 = arith.constant 0 : index
      %24 = vector.load %arg8[%c0_17, %c0_18] : memref<16x64xf32, #tpu.memory_space<vmem>>, vector<16x64xf32>
      %25 = arith.truncf %24 : vector<16x64xf32> to vector<16x64xbf16>
      %c0_19 = arith.constant 0 : index
      %c0_20 = arith.constant 0 : index
      %26 = vector.load %arg7[%c0_19, %c0_20] : memref<16x64xbf16, #tpu.memory_space<vmem>>, vector<16x64xbf16>
      tpu.vector_store %arg7[%c0_19, %c0_20], %25 {strides = array<i32>} : memref<16x64xbf16, #tpu.memory_space<vmem>>, vector<16x64xbf16>,
    } else {
    }
    return
  }
  func.func @transform_0(%arg0: i32, %arg1: i32) -> (i32, i32) {
    %c0_i32 = arith.constant 0 : i32
    %c0_i32_0 = arith.constant 0 : i32
    return %arg0, %c0_i32 : i32, i32
  }
  func.func @transform_1(%arg0: i32, %arg1: i32) -> (i32, i32) {
    %c0_i32 = arith.constant 0 : i32
    %c0_i32_0 = arith.constant 0 : i32
    %c0_i32_1 = arith.constant 0 : i32
    return %c0_i32, %c0_i32_0 : i32, i32
  }
  func.func @transform_2(%arg0: i32, %arg1: i32) -> (i32, i32) {
    %c0_i32 = arith.constant 0 : i32
    %c0_i32_0 = arith.constant 0 : i32
    return %c0_i32, %arg1 : i32, i32
  }
  func.func @transform_3(%arg0: i32, %arg1: i32) -> (i32, i32) {
    %c0_i32 = arith.constant 0 : i32
    %c0_i32_0 = arith.constant 0 : i32
    return %c0_i32, %arg1 : i32, i32
  }
  func.func @transform_4(%arg0: i32, %arg1: i32) -> (i32, i32) {
    %c0_i32 = arith.constant 0 : i32
    %c0_i32_0 = arith.constant 0 : i32
    return %arg1, %c0_i32 : i32, i32
  }
  func.func @transform_5(%arg0: i32, %arg1: i32) -> (i32, i32) {
    %c0_i32 = arith.constant 0 : i32
    %c0_i32_0 = arith.constant 0 : i32
    return %arg0, %c0_i32 : i32, i32
  }
}

module attributes {stable_mosaic.version = 11 : i64} {
  func.func @_matmul_kernel(%arg0: i32, %arg1: i32, %arg2: i32, %arg3: memref<16x64xbf16, #tpu.memory_space<vmem>>, %arg4: memref<64x64xbf16, #tpu.memory_space<vmem>>, %arg5: memref<16x64xbf16, #tpu.memory_space<vmem>>, %arg6: memref<16x64xf32, #tpu.memory_space<vmem>>) attributes {dimension_semantics = [#tpu.dimension_semantics<parallel>, #tpu.dimension_semantics<parallel>, #tpu.dimension_semantics<arbitrary>], iteration_bounds = array<i64: 1, 1, 1>, scalar_prefetch = 0 : i64, scratch_operands = 1 : i64, tpu.core_type = #tpu.core_type<tc>, window_params = [{transform_indices = @transform_0, window_bounds = array<i64: 16, 64>}, {transform_indices = @transform_1, window_bounds = array<i64: 64, 64>}, {transform_indices = @transform_2, window_bounds = array<i64: 16, 64>}]} {
    %c0_i32 = arith.constant 0 : i32
    %0 = arith.cmpi eq, %arg2, %c0_i32 : i32
    %1 = arith.extui %0 : i1 to i32
    %c0_i32_0 = arith.constant 0 : i32
    %2 = arith.cmpi ne, %1, %c0_i32_0 : i32
    scf.if %2 {
      %cst_10 = arith.constant 0.000000e+00 : f32
      %12 = vector.broadcast %cst_10 : f32 to vector<16x64xf32>
      %c0_11 = arith.constant 0 : index
      %c0_12 = arith.constant 0 : index
      %13 = vector.load %arg6[%c0_11, %c0_12] : memref<16x64xf32, #tpu.memory_space<vmem>>, vector<16x64xf32>
      tpu.vector_store %arg6[%c0_11, %c0_12], %12 {strides = array<i32>} : memref<16x64xf32, #tpu.memory_space<vmem>>, vector<16x64xf32>,
    } else {
    }
    %c0 = arith.constant 0 : index
    %c0_1 = arith.constant 0 : index
    %3 = vector.load %arg6[%c0, %c0_1] : memref<16x64xf32, #tpu.memory_space<vmem>>, vector<16x64xf32>
    %c0_2 = arith.constant 0 : index
    %c0_3 = arith.constant 0 : index
    %4 = vector.load %arg3[%c0_2, %c0_3] : memref<16x64xbf16, #tpu.memory_space<vmem>>, vector<16x64xbf16>
    %c0_4 = arith.constant 0 : index
    %c0_5 = arith.constant 0 : index
    %5 = vector.load %arg4[%c0_4, %c0_5] : memref<64x64xbf16, #tpu.memory_space<vmem>>, vector<64x64xbf16>
    %cst = arith.constant dense<0.000000e+00> : vector<16x64xf32>
    %6 = tpu.matmul %4, %5, %cst {dimension_numbers = #tpu.dot_dimension_numbers<[1], [0], [0], [1], [0, 0, 1, 1], [], []>} : vector<16x64xbf16>, vector<64x64xbf16>, vector<16x64xf32> -> vector<16x64xf32>
    %7 = arith.addf %3, %6 : vector<16x64xf32>
    %c0_6 = arith.constant 0 : index
    %c0_7 = arith.constant 0 : index
    %8 = vector.load %arg6[%c0_6, %c0_7] : memref<16x64xf32, #tpu.memory_space<vmem>>, vector<16x64xf32>
    tpu.vector_store %arg6[%c0_6, %c0_7], %7 {strides = array<i32>} : memref<16x64xf32, #tpu.memory_space<vmem>>, vector<16x64xf32>,
    %c0_i32_8 = arith.constant 0 : i32
    %9 = arith.cmpi eq, %arg2, %c0_i32_8 : i32
    %10 = arith.extui %9 : i1 to i32
    %c0_i32_9 = arith.constant 0 : i32
    %11 = arith.cmpi ne, %10, %c0_i32_9 : i32
    scf.if %11 {
      %c0_10 = arith.constant 0 : index
      %c0_11 = arith.constant 0 : index
      %12 = vector.load %arg6[%c0_10, %c0_11] : memref<16x64xf32, #tpu.memory_space<vmem>>, vector<16x64xf32>
      %13 = arith.truncf %12 : vector<16x64xf32> to vector<16x64xbf16>
      %c0_12 = arith.constant 0 : index
      %c0_13 = arith.constant 0 : index
      %14 = vector.load %arg5[%c0_12, %c0_13] : memref<16x64xbf16, #tpu.memory_space<vmem>>, vector<16x64xbf16>
      tpu.vector_store %arg5[%c0_12, %c0_13], %13 {strides = array<i32>} : memref<16x64xbf16, #tpu.memory_space<vmem>>, vector<16x64xbf16>,
    } else {
    }
    return
  }
  func.func @transform_0(%arg0: i32, %arg1: i32, %arg2: i32) -> (i32, i32) {
    %c0_i32 = arith.constant 0 : i32
    return %arg0, %arg2 : i32, i32
  }
  func.func @transform_1(%arg0: i32, %arg1: i32, %arg2: i32) -> (i32, i32) {
    %c0_i32 = arith.constant 0 : i32
    return %arg2, %arg1 : i32, i32
  }
  func.func @transform_2(%arg0: i32, %arg1: i32, %arg2: i32) -> (i32, i32) {
    %c0_i32 = arith.constant 0 : i32
    return %arg0, %arg1 : i32, i32
  }
}

module attributes {stable_mosaic.version = 11 : i64} {
  func.func @_rms_matmul_kernel(%arg0: i32, %arg1: i32, %arg2: memref<16x64xbf16, #tpu.memory_space<vmem>>, %arg3: memref<1x64xf32, #tpu.memory_space<vmem>>, %arg4: memref<64x128xbf16, #tpu.memory_space<vmem>>, %arg5: memref<16x128xf32, #tpu.memory_space<vmem>>, %arg6: memref<16x64xbf16, #tpu.memory_space<vmem>>) attributes {dimension_semantics = [#tpu.dimension_semantics<parallel>, #tpu.dimension_semantics<arbitrary>], iteration_bounds = array<i64: 1, 1>, scalar_prefetch = 0 : i64, scratch_operands = 1 : i64, tpu.core_type = #tpu.core_type<tc>, window_params = [{transform_indices = @transform_0, window_bounds = array<i64: 16, 64>}, {pipeline_mode = #tpu.pipeline_mode<synchronous>, transform_indices = @transform_1, window_bounds = array<i64: 1, 64>}, {transform_indices = @transform_2, window_bounds = array<i64: 64, 128>}, {transform_indices = @transform_3, window_bounds = array<i64: 16, 128>}]} {
    %c0_i32 = arith.constant 0 : i32
    %0 = arith.cmpi eq, %arg1, %c0_i32 : i32
    %1 = arith.extui %0 : i1 to i32
    %c0_i32_0 = arith.constant 0 : i32
    %2 = arith.cmpi ne, %1, %c0_i32_0 : i32
    scf.if %2 {
      %c0_6 = arith.constant 0 : index
      %c0_7 = arith.constant 0 : index
      %7 = vector.load %arg2[%c0_6, %c0_7] : memref<16x64xbf16, #tpu.memory_space<vmem>>, vector<16x64xbf16>
      %8 = arith.extf %7 : vector<16x64xbf16> to vector<16x64xf32>
      %9 = arith.mulf %8, %8 : vector<16x64xf32>
      %cst_8 = arith.constant dense<0.000000e+00> : vector<16xf32>
      %10 = vector.multi_reduction <add>, %9, %cst_8 [1] : vector<16x64xf32> to vector<16xf32>
      %11 = vector.shape_cast %10 : vector<16xf32> to vector<16x1xf32>
      %cst_9 = arith.constant 6.400000e+01 : f32
      %12 = vector.broadcast %cst_9 : f32 to vector<16x1xf32>
      %13 = arith.divf %11, %12 : vector<16x1xf32>
      %cst_10 = arith.constant 9.99999974E-6 : f32
      %14 = vector.broadcast %cst_10 : f32 to vector<16x1xf32>
      %15 = arith.addf %13, %14 : vector<16x1xf32>
      %16 = math.rsqrt %15 : vector<16x1xf32>
      %17 = vector.broadcast %16 : vector<16x1xf32> to vector<16x64xf32>
      %18 = arith.mulf %8, %17 : vector<16x64xf32>
      %c0_11 = arith.constant 0 : index
      %c0_12 = arith.constant 0 : index
      %19 = vector.load %arg3[%c0_11, %c0_12] : memref<1x64xf32, #tpu.memory_space<vmem>>, vector<1x64xf32>
      %20 = vector.broadcast %19 : vector<1x64xf32> to vector<16x64xf32>
      %21 = arith.mulf %18, %20 : vector<16x64xf32>
      %22 = arith.truncf %21 : vector<16x64xf32> to vector<16x64xbf16>
      %c0_13 = arith.constant 0 : index
      %c0_14 = arith.constant 0 : index
      %23 = vector.load %arg6[%c0_13, %c0_14] : memref<16x64xbf16, #tpu.memory_space<vmem>>, vector<16x64xbf16>
      tpu.vector_store %arg6[%c0_13, %c0_14], %22 {strides = array<i32>} : memref<16x64xbf16, #tpu.memory_space<vmem>>, vector<16x64xbf16>,
    } else {
    }
    %c0 = arith.constant 0 : index
    %c0_1 = arith.constant 0 : index
    %3 = vector.load %arg6[%c0, %c0_1] : memref<16x64xbf16, #tpu.memory_space<vmem>>, vector<16x64xbf16>
    %c0_2 = arith.constant 0 : index
    %c0_3 = arith.constant 0 : index
    %4 = vector.load %arg4[%c0_2, %c0_3] : memref<64x128xbf16, #tpu.memory_space<vmem>>, vector<64x128xbf16>
    %cst = arith.constant dense<0.000000e+00> : vector<16x128xf32>
    %5 = tpu.matmul %3, %4, %cst {dimension_numbers = #tpu.dot_dimension_numbers<[1], [0], [0], [1], [0, 0, 1, 1], [], []>} : vector<16x64xbf16>, vector<64x128xbf16>, vector<16x128xf32> -> vector<16x128xf32>
    %c0_4 = arith.constant 0 : index
    %c0_5 = arith.constant 0 : index
    %6 = vector.load %arg5[%c0_4, %c0_5] : memref<16x128xf32, #tpu.memory_space<vmem>>, vector<16x128xf32>
    tpu.vector_store %arg5[%c0_4, %c0_5], %5 {strides = array<i32>} : memref<16x128xf32, #tpu.memory_space<vmem>>, vector<16x128xf32>,
    return
  }
  func.func @transform_0(%arg0: i32, %arg1: i32) -> (i32, i32) {
    %c0_i32 = arith.constant 0 : i32
    %c0_i32_0 = arith.constant 0 : i32
    return %arg0, %c0_i32 : i32, i32
  }
  func.func @transform_1(%arg0: i32, %arg1: i32) -> (i32, i32) {
    %c0_i32 = arith.constant 0 : i32
    %c0_i32_0 = arith.constant 0 : i32
    %c0_i32_1 = arith.constant 0 : i32
    return %c0_i32, %c0_i32_0 : i32, i32
  }
  func.func @transform_2(%arg0: i32, %arg1: i32) -> (i32, i32) {
    %c0_i32 = arith.constant 0 : i32
    %c0_i32_0 = arith.constant 0 : i32
    return %c0_i32, %arg1 : i32, i32
  }
  func.func @transform_3(%arg0: i32, %arg1: i32) -> (i32, i32) {
    %c0_i32 = arith.constant 0 : i32
    return %arg0, %arg1 : i32, i32
  }
}

</mosaic_0001>

<bundles_post_ra>
// kernel: _forward_impl.9
= control target key start
LH: loop header
LB: loop body
LE: loop exit
PB: predicated region body
PF: predicated region fallthrough
CT: control target
= control target key end

     0   :  { %vm25_vm0 = vcmask 523264   ;;  %v184_v7 = vmov 64.0   ;;  %vm73_vm5 = vcmask 519168   ;;  %s229_s0 = inlined_call_operand.vmem [shape: bf16[16,64], index: 0, kind: input, shape index: {}]   ;;  %s230_s1 = inlined_call_operand.vmem [shape: f32[1,64], index: 1, kind: input, shape index: {}]   ;;  %s231_s2 = inlined_call_operand.vmem [shape: bf16[64,128], index: 2, kind: input, shape index: {}]   ;;  %s232_s3 = inlined_call_operand.vmem [shape: bf16[16,128], index: 3, kind: output, shape index: {}]  }
   0x1   :  { %v168_v0 = vld [vmem:[%s229_s0] sm:$0xff]   ;;  %178 = vrcp.f32 %v184_v7  ;;  %v166_v13 = vld [vmem:[%s231_s2 + $0x18] sm:$0xff]  ;;  %v165_v17 = vld [vmem:[%s231_s2 + $0x10] sm:$0xff] }
   0x2   :  { %v169_v1 = vunpack.c.l.bf16 %v168_v0  ;;  %v170_v3 = vunpack.c.h.bf16 %v168_v0  ;;  %123 = vmatpush.bf16.msra.mxu0 %v166_v13  ;;  %v164_v19 = vld [vmem:[%s231_s2 + $0x8] sm:$0xff]  ;;  %v163_v20 = vld [vmem:[%s231_s2] sm:$0xff] }
   0x3   :  { %v177_v32 = vld [vmem:[%s230_s1] ss:$0 sm:$0xff] }
   0x4   :  { %v23_v2 = vmul.f32 %v169_v1, %v169_v1  ;;  %v24_v5 = vmul.f32 %v170_v3, %v170_v3 }
   0x6   :  { %v26_v4 = vsel %vm25_vm0, %v23_v2, 0.0  ;;  %v29_v6 = vsel %vm25_vm0, %v24_v5, 0.0  ;;  %124 = vmatpush.bf16.msra.mxu0 %v165_v17 }
   0x7   :  { %27 = vadd.xlane.f32.xlu0 %v26_v4  ;;  %v179_v8 = vpop.eup %178 }
   0x8   :  { %v33_v9 = vmul.f32 64.0, %v179_v8  ;;  %vm37_vm1 = vweird.f32 %v179_v8 }
   0xa   :  { %v34_v10 = vsub.f32 1.0, %v33_v9  ;;  %125 = vmatpush.bf16.msra.mxu0 %v164_v19 }
   0xc   :  { %v35_v11 = vmul.f32 %v179_v8, %v34_v10 }
   0xe   :  { %v36_v12 = vadd.f32 %v179_v8, %v35_v11  ;;  %126 = vmatpush.bf16.msra.mxu0 %v163_v20 }
   0xf   :  { %30 = vadd.xlane.f32.xlu0 %v29_v6 }
  0x10   :  { %v38_v14 = vsel %vm37_vm1, %v179_v8, %v36_v12 }
  0x7a   :  { %v28_v15 = vpop.xlane.xlu0 %27 }
  0x7b   :  { %v39_v16 = vmul.f32 %v38_v14, %v28_v15 }
  0x7d   :  { %v41_v18 = vadd.f32 1e-05, %v39_v16 }
  0x7f   :  { %180 = vrsqrt.f32 %v41_v18  ;;  %vm49_vm3 = vweird.f32 %v41_v18 }
  0x82   :  { %v31_v21 = vpop.xlane.xlu0 %30 }
  0x83   :  { %v40_v22 = vmul.f32 %v38_v14, %v31_v21 }
  0x85   :  { %v181_v23 = vpop.eup %180  ;;  %v42_v24 = vadd.f32 1e-05, %v40_v22 }
  0x86   :  { %v44_v25 = vmul.f32 %v181_v23, %v41_v18  ;;  %vm50_vm2 = vweird.f32 %v181_v23 }
  0x87   :  { %182 = vrsqrt.f32 %v42_v24  ;;  %vm51_vm4 = vmor %vm49_vm3, %vm50_vm2  ;;  %vm59_vm7 = vweird.f32 %v42_v24 }
  0x88   :  { %v45_v26 = vmul.f32 %v181_v23, %v44_v25 }
  0x8a   :  { %v46_v27 = vmul.f32 0.5, %v45_v26 }
  0x8c   :  { %v47_v28 = vsub.f32 1.5, %v46_v27 }
  0x8d   :  { %v183_v29 = vpop.eup %182 }
  0x8e   :  { %v48_v30 = vmul.f32 %v181_v23, %v47_v28  ;;  %v54_v31 = vmul.f32 %v183_v29, %v42_v24  ;;  %vm60_vm6 = vweird.f32 %v183_v29 }
  0x8f   :  { %vm61_vm8 = vmor %vm59_vm7, %vm60_vm6 }
  0x90   :  { %v52_v33 = vsel %vm51_vm4, %v181_v23, %v48_v30  ;;  %v55_v34 = vmul.f32 %v183_v29, %v54_v31 }
  0x91   :  { %v63_v35 = vmul.f32 %v169_v1, %v52_v33 }
  0x92   :  { %v56_v36 = vmul.f32 0.5, %v55_v34 }
  0x93   :  { %v69_v37 = vmul.f32 %v177_v32, %v63_v35 }
  0x94   :  { %v57_v38 = vsub.f32 1.5, %v56_v36 }
  0x95   :  { %v71_v39 = vpack.c.bf16 %v69_v37, %v69_v37 }
  0x96   :  { %v58_v40 = vmul.f32 %v183_v29, %v57_v38 }
  0x97   :  { %74 = vst.msk [vmem:[#allocation2] sm:$0xf] %vm73_vm5, %v71_v39 }
  0x98   :  { %v62_v41 = vsel %vm61_vm8, %v183_v29, %v58_v40 }
  0x99   :  { %v64_v42 = vmul.f32 %v170_v3, %v62_v41 }
  0x9b   :  { %v70_v43 = vmul.f32 %v177_v32, %v64_v42 }
  0x9d   :  { %v72_v44 = vpack.c.bf16 %v70_v43, %v70_v43 }
  0x9f   :  { %75 = vst.msk [vmem:[#allocation2 + $0x4] sm:$0xf] %vm73_vm5, %v72_v44 }
  0xa6   :  { %v162_v45 = vld [vmem:[#allocation2] sm:$0xff] }
  0xa7   :  { %161 = vmatmul.msk.bf16.vlgmr.msra.gmra.mxu0 %vm25_vm0, %v162_v45 }
 0x124   :  { %v128_v46 = vpop.f32.mrf.mxu0 }
 0x12c   :  { %v130_v47 = vpop.f32.mrf.mxu0 }
 0x12d   :  { %v174_v48 = vpack.c.bf16 %v130_v47, %v128_v46 }
 0x12f   :  { %175 = vst [vmem:[%s232_s3] sm:$0xff] %v174_v48  }

// kernel: _forward_impl.10
= control target key start
LH: loop header
LB: loop body
LE: loop exit
PB: predicated region body
PF: predicated region fallthrough
CT: control target
= control target key end

     0   :  { %s856_s17 = smov 0   ;;  %s858_s18 = smov 0   ;;  %s962_s0 = inlined_call_operand.<no memory space> [shape: s32[1], index: 0, kind: input, shape index: {}]   ;;  %s963_s1 = inlined_call_operand.vmem [shape: bf16[2,2,16,16], index: 1, kind: input, shape index: {}]   ;;  %s964_s2 = inlined_call_operand.vmem [shape: bf16[2,2,16,16], index: 2, kind: input, shape index: {}]   ;;  %s965_s3 = inlined_call_operand.vmem [shape: bf16[2,2,16,16], index: 3, kind: input, shape index: {}]   ;;  %s966_s4 = inlined_call_operand.vmem [shape: bf16[2,2,16,16], index: 4, kind: output, shape index: {}]  }
   0x1   :  { %9 = sst [smem:[#allocation6]] %s962_s0  ;;  %s860_s19 = smov 0  }
   0x2   :  { %s862_s20 = smov 0   ;;  %s864_s21 = smov 0  }
   0x3   :  { %s866_s22 = smov 0   ;;  %s868_s23 = smov 0  }
   0x4 LB: > { %s27_s0 = sadd.s32 1, %s810_s20  ;;  %s30_s24 = sadd.s32 1, %s814_s21  ;;  %s822_s23 = sphi %s868_s23, %s15_s23   ;;  %s818_s22 = sphi %s866_s22, %s974_s22   ;;  %s814_s21 = sphi %s864_s21, %s973_s21   ;;  %s810_s20 = sphi %s862_s20, %s972_s20   ;;  %s806_s19 = sphi %s860_s19, %s971_s19   ;;  %s802_s18 = sphi %s858_s18, %s970_s18   ;;  %s798_s17 = sphi %s856_s17, %s969_s17  }
   0x5   : > { %p28_p0 = scmp.ge.s32.totalorder %s27_s0, 2  ;;  %p666_p1 = scmp.ge.s32.totalorder %s822_s23, 1 }
   0x6   : > { %p208_p2 = scmp.lt.s32.totalorder %s822_s23, 9  ;;  %s34_s25 = sadd.s32 1, %s818_s22 }
   0x7   : > { %s976_s0 = smov (%p28_p0, %s27_s0), 0  ;;  %s978_s24 = smov (!%p28_p0, %s30_s24), %s814_s21 }
   0x8   : > { %p209_p3 = pnand %p666_p1, %p208_p2  ;;  %p32_p4 = scmp.ge.s32.totalorder %s978_s24, 2 }
   0x9   : > { %p264_p6 = scmp.lt.s32.totalorder (!%p209_p3), %s806_s19, 1  ;;  %p266_p7 = scmp.lt.s32.totalorder (!%p209_p3), %s802_s18, 1 }
   0xa   : > { %s980_s24 = smov (%p32_p4, %s978_s24), 0  ;;  %s982_s25 = smov (!%p32_p4, %s34_s25), %s818_s22 }
   0xb   : > { %p36_p5 = scmp.ge.s32.totalorder %s982_s25, 2  ;;  %212 = sbr.rel (%p209_p3) target bundleno = 715 (0x2cb), region = 32 }
   0xc   : > { %s900_s26 = sld [smem:[#allocation6]] (!%p209_p3)  ;;  %p277_p8 = scmp.lt.s32.totalorder (!%p209_p3), %s798_s17, 1 }
   0xd   : > { %s984_s25 = smov (%p36_p5, %s982_s25), 0  ;;  %p679_p9 = scmp.ne.s32.totalorder (!%p209_p3), %s798_s17, 0 }
   0xe   : > { %967 = sst [smem:[#allocation7_spill]] %s984_s25 }
  0x10   : > { %s986_s19 = smov (!%p264_p6, %s806_s19), 1  ;;  %s988_s18 = smov (!%p266_p7, %s802_s18), 1 }
  0x11   : > { %s668_s27 = sshll.u32 %s986_s19, 2  ;;  %s667_s28 = sshll.u32 %s988_s18, 1 }
  0x12   : > { %s270_s29 = sadd.s32 %s668_s27, %s667_s28 }
  0x13   : > { %s669_s30 = sshll.u32 %s270_s29, 2 }
  0x14   : > { %s272_s7 = scalar_lea.vmem %s963_s1, %s669_s30  ;;  %s909_s10 = scalar_lea.vmem %s966_s4, %s669_s30 }
  0x15   : > { %s278_s11 = scalar_select %p277_p8, %s798_s17, 1 }
  0x16   : > { %311 = sbr.rel (%p679_p9) target bundleno = 34 (0x22), region = 36 }
  0x17   : > { %s280_s12 = sadd.s32 %s667_s28, %s278_s11 }
  0x18   : > { %s282_s13 = sadd.s32 %s668_s27, %s280_s12 }
  0x19   : > { %s672_s14 = sshll.u32 %s282_s13, 2 }
  0x1a   : > { %s284_s18 = scalar_lea.vmem %s964_s2, %s672_s14  ;;  %s918_s29 = scalar_lea.vmem %s965_s3, %s672_s14 }
  0x1b   : > { %vm312_vm0 = vcmask 7168   ;;  %v824_v0 = vmov -1e+30   ;;  %vm317_vm1 = vcmask 130048   ;;  %v825_v1 = vmov 0.0  }
  0x1c   : > { %313 = vst.msk [vmem:[#allocation2] sm:$0xff] %vm312_vm0, %v824_v0 }
  0x1d   : > { %314 = vst.msk [vmem:[#allocation2 + $0x8] sm:$0xff] %vm312_vm0, %v824_v0 }
  0x1e   : > { %315 = vst.msk [vmem:[#allocation3] sm:$0xff] %vm312_vm0, %v825_v1 }
  0x1f   : > { %316 = vst.msk [vmem:[#allocation3 + $0x8] sm:$0xff] %vm312_vm0, %v825_v1 }
  0x20   : > { %318 = vst.msk [vmem:[#allocation4] sm:$0xff] %vm317_vm1, %v825_v1 }
  0x21   : > { %319 = vst.msk [vmem:[#allocation4 + $0x8] sm:$0xff] %vm317_vm1, %v825_v1 }
  0x22 PF: > { %s680_s27 = sshll.u32 %s798_s17, 3  ;;  %s321_s25 = sadd.s32 7, %s900_s26 }
  0x23   : > { %p681_p10 = scmp.gt.s32.totalorder %s680_s27, %s321_s25 }
  0x25   : > { %325 = sbr.rel (%p681_p10) target bundleno = 572 (0x23c), region = 40 }
  0x2a   : > { %v328_v2 = vld [vmem:[%s284_s18] sm:$0xf]  ;;  %vm334_vm2 = vcmask 130048   ;;  %v357_v5 = vlaneseq  ;;  %v362_v9 = vstv %s680_s27  ;;  %v388_v10 = vstv %s900_s26  ;;  %v396_v30 = vld [vmem:[#allocation2 + $0x8] sm:$0xff]  ;;  %v428_v50 = vld [vmem:[#allocation3] sm:$0xff] }
  0x2b   : > { %v339_v3 = vsel %vm334_vm2, %v328_v2, 0  ;;  %v691_v4 = vld [vmem:[%s272_s7] sm:$0xff]  ;;  %vm397_vm4 = vcmask 64512   ;;  %v826_v24 = vmov 0   ;;  %vm440_vm6 = vcmask 7168   ;;  %v429_v54 = vld [vmem:[#allocation3 + $0x8] sm:$0xff] }
  0x2c   : > { %348 = vmatpush.bf16.xpose.msra.mxu0 %v339_v3  ;;  %v358_v6 = vshrl.u32 %v357_v5, 7  ;;  %v361_v7 = vand.u32 127, %v357_v5  ;;  %752 = vset.pattern.permute.xlu1 %v826_v24  ;;  %v395_v25 = vld [vmem:[#allocation2] sm:$0xff]  ;;  %vm462_vm7 = vcmask 1043456   ;;  %v444_v63 = vld [vmem:[#allocation4 + $0x8] sm:$0xff] }
  0x2d   : > { %753 = vset.pattern.permute.xlu2 %v826_v24  ;;  %754 = vset.pattern.permute.xlu0 %v826_v24  ;;  %v458_v37 = vld [vmem:[%s918_s29] sm:$0xf] }
  0x2e   : > { %v368_v8 = vand.u32 7, %v358_v6  ;;  %v363_v11 = vadd.s32 %v362_v9, %v361_v7  ;;  %v359_v13 = vadd.s32 8, %v358_v6  ;;  %v464_v38 = vsel %vm462_vm7, %v458_v37, 0  ;;  %v443_v59 = vld [vmem:[#allocation4] sm:$0xff] }
  0x2f   : > { %473 = vmatpush.bf16.msra.mxu1 %v464_v38 }
  0x30   : > { %v389_v12 = vadd.s32 %v388_v10, %v368_v8  ;;  %v375_v15 = vand.u32 7, %v359_v13 }
  0x32   : > { %vm391_vm3 = vcmp.le.s32.totalorder %v363_v11, %v389_v12  ;;  %v390_v19 = vadd.s32 %v388_v10, %v375_v15 }
  0x33   : > { %686 = vmatmul.msk.bf16.vlgmr.msra.gmra.mxu0 %vm334_vm2, %v691_v4 }
  0x34   : > { %vm392_vm5 = vcmp.le.s32.totalorder %v363_v11, %v390_v19 }
  0xb0   : > { %v350_v14 = vpop.f32.mrf.mxu0 }
  0xb1   : > { %v355_v16 = vmul.f32 0.25, %v350_v14 }
  0xb3   : > { %v393_v17 = vsel %vm391_vm3, %v355_v16, -1e+30 }
  0xb4   : > { %v398_v18 = vsel %vm397_vm4, %v393_v17, -inf }
  0xb5   : > { %399 = vmax.xlane.f32.xlu0 %v398_v18 }
  0xb8   : > { %v352_v20 = vpop.f32.mrf.mxu0 }
  0xb9   : > { %v356_v21 = vmul.f32 0.25, %v352_v20 }
  0xbb   : > { %v394_v22 = vsel %vm392_vm5, %v356_v21, -1e+30 }
  0xbc   : > { %v401_v23 = vsel %vm397_vm4, %v394_v22, -inf }
  0xbd   : > { %402 = vmax.xlane.f32.xlu0 %v401_v23 }
 0x128   : > { %v400_v26 = vpop.xlane.xlu0 %399 }
 0x129   : > { %v404_v27 = vmax.f32 %v395_v25, %v400_v26 }
 0x12b   : > { %v406_v28 = vsub.f32 %v395_v25, %v404_v27  ;;  %484 = vst.msk [vmem:[#allocation2] sm:$0xff] %vm440_vm6, %v404_v27  ;;  %414 = vperm.xlu1 %752, %v404_v27  }
 0x12d   : > { %v408_v29 = vmul.f32 1.442695, %v406_v28 }
 0x12f   : > { %755 = vpow2.f32 %v408_v29 }
 0x130   : > { %v403_v31 = vpop.xlane.xlu0 %402 }
 0x131   : > { %v405_v32 = vmax.f32 %v396_v30, %v403_v31 }
 0x133   : > { %v407_v33 = vsub.f32 %v396_v30, %v405_v32  ;;  %485 = vst.msk [vmem:[#allocation2 + $0x8] sm:$0xff] %vm440_vm6, %v405_v32  ;;  %419 = vperm.xlu1 %752, %v405_v32  }
 0x135   : > { %v756_v34 = vpop.eup %755  ;;  %v410_v35 = vmul.f32 1.442695, %v407_v33 }
 0x136   : > { %447 = vperm.xlu2 %753, %v756_v34   ;;  %v430_v51 = vmul.f32 %v756_v34, %v428_v50 }
 0x137   : > { %757 = vpow2.f32 %v410_v35 }
 0x13d   : > { %v758_v36 = vpop.eup %757 }
 0x13e   : > { %452 = vperm.xlu2 %753, %v758_v36   ;;  %v431_v55 = vmul.f32 %v758_v36, %v429_v54 }
 0x190   : > { %v448_v58 = vpop.permute.xlu2 %447 }
 0x191   : > { %v455_v60 = vmul.f32 %v448_v58, %v443_v59 }
 0x198   : > { %v453_v0 = vpop.permute.xlu2 %452 }
 0x199   : > { %v456_v1 = vmul.f32 %v453_v0, %v444_v63 }
 0x19d   : > { %v415_v39 = vpop.permute.xlu1 %414 }
 0x19e   : > { %v422_v40 = vsub.f32 %v393_v17, %v415_v39 }
 0x1a0   : > { %v424_v41 = vmul.f32 1.442695, %v422_v40 }
 0x1a2   : > { %759 = vpow2.f32 %v424_v41 }
 0x1a5   : > { %v420_v42 = vpop.permute.xlu1 %419 }
 0x1a6   : > { %v423_v43 = vsub.f32 %v394_v22, %v420_v42 }
 0x1a8   : > { %v760_v44 = vpop.eup %759  ;;  %v426_v45 = vmul.f32 1.442695, %v423_v43 }
 0x1a9   : > { %v432_v46 = vsel %vm397_vm4, %v760_v44, 0.0 }
 0x1aa   : > { %761 = vpow2.f32 %v426_v45  ;;  %433 = vadd.xlane.f32.xlu0 %v432_v46 }
 0x1b0   : > { %v762_v47 = vpop.eup %761 }
 0x1b1   : > { %v435_v48 = vsel %vm397_vm4, %v762_v47, 0.0  ;;  %v457_v49 = vpack.c.bf16 %v762_v47, %v760_v44 }
 0x1b2   : > { %436 = vadd.xlane.f32.xlu1 %v435_v48 }
 0x1b3   : > { %687 = vmatmul.msk.bf16.vlgmr.msra.gmra.mxu1 %vm397_vm4, %v457_v49 }
 0x21d   : > { %v434_v52 = vpop.xlane.xlu0 %433 }
 0x21e   : > { %v438_v53 = vadd.f32 %v434_v52, %v430_v51 }
 0x220   : > { %441 = vst.msk [vmem:[#allocation3] sm:$0xff] %vm440_vm6, %v438_v53 }
 0x225   : > { %v437_v56 = vpop.xlane.xlu1 %436 }
 0x226   : > { %v439_v57 = vadd.f32 %v437_v56, %v431_v55 }
 0x228   : > { %442 = vst.msk [vmem:[#allocation3 + $0x8] sm:$0xff] %vm440_vm6, %v439_v57 }
 0x230   : > { %v475_v61 = vpop.f32.mrf.mxu1 }
 0x231   : > { %v480_v62 = vadd.f32 %v475_v61, %v455_v60 }
 0x233   : > { %482 = vst.msk [vmem:[#allocation4] sm:$0xff] %vm334_vm2, %v480_v62 }
 0x238   : > { %v477_v2 = vpop.f32.mrf.mxu1 }
 0x239   : > { %v481_v3 = vadd.f32 %v477_v2, %v456_v1 }
 0x23b   : > { %483 = vst.msk [vmem:[#allocation4 + $0x8] sm:$0xff] %vm334_vm2, %v481_v3 }
 0x23c PF: > { %p688_p11 = scmp.ne.s32.totalorder %s798_s17, 1 }
 0x23e   : > { %489 = sbr.rel (%p688_p11) target bundleno = 715 (0x2cb), region = 44 }
 0x243   : > { %v492_v4 = vld [vmem:[#allocation3] sm:$0xff]  ;;  %v827_v5 = vmov 0   ;;  %v493_v6 = vld [vmem:[#allocation3 + $0x8] sm:$0xff]  ;;  %v490_v9 = vld [vmem:[#allocation4] sm:$0xff]  ;;  %vm510_vm8 = vcmask 125952  }
 0x244   : > { %763 = vset.pattern.permute.xlu0 %v827_v5  ;;  %764 = vrcp.f32 %v492_v4  ;;  %v491_v13 = vld [vmem:[#allocation4 + $0x8] sm:$0xff] }
 0x245   : > { %766 = vrcp.f32 %v493_v6 }
 0x24a   : > { %v765_v7 = vpop.eup %764 }
 0x24b   : > { %498 = vperm.xlu0 %763, %v765_v7   ;;  %v767_v8 = vpop.eup %766 }
 0x253   : > { %503 = vperm.xlu0 %763, %v767_v8  }
 0x2bd   : > { %v499_v10 = vpop.permute.xlu0 %498 }
 0x2be   : > { %v506_v11 = vmul.f32 %v499_v10, %v490_v9 }
 0x2c0   : > { %v508_v12 = vpack.c.bf16 %v506_v11, %v506_v11 }
 0x2c2   : > { %511 = vst.msk [vmem:[%s909_s10] sm:$0xf] %vm510_vm8, %v508_v12 }
 0x2c5   : > { %v504_v14 = vpop.permute.xlu0 %503 }
 0x2c6   : > { %v507_v15 = vmul.f32 %v504_v14, %v491_v13 }
 0x2c8   : > { %v509_v16 = vpack.c.bf16 %v507_v15, %v507_v15 }
 0x2ca   : > { %512 = vst.msk [vmem:[%s909_s10 + $0x4] sm:$0xf] %vm510_vm8, %v509_v16 }
 0x2cb PF: > { %s15_s23 = sadd.s32 1, %s822_s23   ;;  %s968_s26 = sld [smem:[#allocation7_spill]] }
 0x2cc   : > { %p12_p12 = scmp.ge.s32.totalorder %s15_s23, 10   ;;  %s969_s17 = smov %s810_s20 }
 0x2cd   : > { %s970_s18 = smov %s814_s21  ;;  %s971_s19 = smov %s818_s22 }
 0x2ce   : > { %s972_s20 = smov %s976_s0  ;;  %s973_s21 = smov %s980_s24 }
 0x2cf   :  { %14 = sbr.rel (!%p12_p12) target bundleno = 4 (0x4), region = 80 }
 0x2d1   : > { %s974_s22 = smov %s968_s26 }

// kernel: _forward_impl.11
= control target key start
LH: loop header
LB: loop body
LE: loop exit
PB: predicated region body
PF: predicated region fallthrough
CT: control target
= control target key end

     0   :  { %vm16_vm0 = vcmask 523264   ;;  %v123_v1 = vmov 0.0   ;;  %vm89_vm1 = vcmask 519168   ;;  %s165_s1 = inlined_call_operand.vmem [shape: bf16[64,64], index: 1, kind: input, shape index: {}]   ;;  %s166_s0 = inlined_call_operand.vmem [shape: bf16[16,64], index: 0, kind: input, shape index: {}]   ;;  %s167_s2 = inlined_call_operand.vmem [shape: bf16[16,64], index: 2, kind: output, shape index: {}]  }
   0x1   :  { %v121_v0 = vld [vmem:[%s165_s1 + $0x18] sm:$0xff]  ;;  %17 = vst.msk [vmem:[#allocation2] sm:$0xff] %vm16_vm0, %v123_v1  ;;  %v120_v2 = vld [vmem:[%s165_s1 + $0x10] sm:$0xff]  ;;  %v119_v3 = vld [vmem:[%s165_s1 + $0x8] sm:$0xff] }
   0x2   :  { %18 = vst.msk [vmem:[#allocation2 + $0x8] sm:$0xff] %vm16_vm0, %v123_v1  ;;  %68 = vmatpush.bf16.msra.mxu0 %v121_v0  ;;  %v118_v4 = vld [vmem:[%s165_s1] sm:$0xff] }
   0x3   :  { %v117_v5 = vld [vmem:[%s166_s0] sm:$0xff] }
   0x6   :  { %69 = vmatpush.bf16.msra.mxu0 %v120_v2 }
   0x8   :  { %v19_v6 = vld [vmem:[#allocation2] sm:$0xff] }
   0x9   :  { %v20_v9 = vld [vmem:[#allocation2 + $0x8] sm:$0xff] }
   0xa   :  { %70 = vmatpush.bf16.msra.mxu0 %v119_v3 }
   0xe   :  { %71 = vmatpush.bf16.msra.mxu0 %v118_v4 }
  0x11   :  { %116 = vmatmul.msk.bf16.vlgmr.msra.gmra.mxu0 %vm16_vm0, %v117_v5 }
  0x8e   :  { %v73_v7 = vpop.f32.mrf.mxu0 }
  0x8f   :  { %v78_v8 = vadd.f32 %v73_v7, %v19_v6 }
  0x91   :  { %80 = vst.msk [vmem:[#allocation2] sm:$0xff] %vm16_vm0, %v78_v8 }
  0x96   :  { %v75_v10 = vpop.f32.mrf.mxu0 }
  0x97   :  { %v79_v11 = vadd.f32 %v75_v10, %v20_v9 }
  0x98   :  { %v85_v12 = vld [vmem:[#allocation2] sm:$0xff] }
  0x99   :  { %v87_v13 = vpack.c.bf16 %v85_v12, %v85_v12  ;;  %81 = vst.msk [vmem:[#allocation2 + $0x8] sm:$0xff] %vm16_vm0, %v79_v11 }
  0x9b   :  { %90 = vst.msk [vmem:[%s167_s2] sm:$0xf] %vm89_vm1, %v87_v13 }
  0xa0   :  { %v86_v14 = vld [vmem:[#allocation2 + $0x8] sm:$0xff] }
  0xa1   :  { %v88_v15 = vpack.c.bf16 %v86_v14, %v86_v14 }
  0xa3   :  { %91 = vst.msk [vmem:[%s167_s2 + $0x4] sm:$0xf] %vm89_vm1, %v88_v15 }

// kernel: _forward_impl.12
= control target key start
LH: loop header
LB: loop body
LE: loop exit
PB: predicated region body
PF: predicated region fallthrough
CT: control target
= control target key end

     0   :  { %vm31_vm0 = vcmask 523264   ;;  %v663_v7 = vmov 64.0   ;;  %vm79_vm5 = vcmask 519168   ;;  %s898_s0 = inlined_call_operand.vmem [shape: bf16[16,64], index: 0, kind: input, shape index: {}]   ;;  %s899_s1 = inlined_call_operand.vmem [shape: f32[1,64], index: 1, kind: input, shape index: {}]   ;;  %s900_s2 = inlined_call_operand.vmem [shape: bf16[64,192], index: 2, kind: input, shape index: {}]   ;;  %s901_s3 = inlined_call_operand.vmem [shape: bf16[64,192], index: 3, kind: input, shape index: {}]   ;;  %s902_s4 = inlined_call_operand.vmem [shape: bf16[192,64], index: 4, kind: input, shape index: {}]   ;;  %s903_s5 = inlined_call_operand.vmem [shape: bf16[16,64], index: 5, kind: output, shape index: {}]  }
   0x1   :  { %v635_v0 = vld [vmem:[%s898_s0] sm:$0xff]   ;;  %641 = vrcp.f32 %v663_v7  ;;  %v510_v13 = vld [vmem:[%s900_s2 + $0x30] sm:$0xf]  ;;  %v613_v14 = vld [vmem:[%s900_s2 + $0x34] sm:$0xf0] }
   0x2   :  { %v698_v1 = vunpack.c.l.bf16 %v635_v0  ;;  %v702_v3 = vunpack.c.h.bf16 %v635_v0  ;;  %v612_v15 = vld [vmem:[%s900_s2 + $0x34] sm:$0xf]  ;;  %v511_v16 = vor.u32 %v613_v14, %v510_v13  ;;  %v512_v17 = vld [vmem:[%s900_s2 + $0x38] sm:$0xf0]  ;;  %v502_v24 = vld [vmem:[%s900_s2 + $0x20] sm:$0xf] }
   0x3   :  { %v620_v18 = vld [vmem:[%s901_s3 + $0x34] sm:$0xf]  ;;  %v546_v19 = vld [vmem:[%s901_s3 + $0x38] sm:$0xf0]  ;;  %v515_v21 = vor.u32 %v612_v15, %v512_v17  ;;  %v611_v25 = vld [vmem:[%s900_s2 + $0x24] sm:$0xf0] }
   0x4   :  { %v29_v2 = vmul.f32 %v698_v1, %v698_v1  ;;  %v30_v5 = vmul.f32 %v702_v3, %v702_v3  ;;  %v549_v22 = vor.u32 %v620_v18, %v546_v19  ;;  %147 = vmatpush.bf16.msra.mxu2 %v511_v16  ;;  %v610_v26 = vld [vmem:[%s900_s2 + $0x24] sm:$0xf]  ;;  %v503_v28 = vor.u32 %v611_v25, %v502_v24  ;;  %v504_v29 = vld [vmem:[%s900_s2 + $0x28] sm:$0xf0]  ;;  %v494_v35 = vld [vmem:[%s900_s2 + $0x10] sm:$0xf] }
   0x5   :  { %161 = vmatpush.bf16.msra.mxu1 %v515_v21  ;;  %v618_v30 = vld [vmem:[%s901_s3 + $0x24] sm:$0xf]  ;;  %v538_v31 = vld [vmem:[%s901_s3 + $0x28] sm:$0xf0]  ;;  %v507_v32 = vor.u32 %v610_v26, %v504_v29  ;;  %v609_v36 = vld [vmem:[%s900_s2 + $0x14] sm:$0xf0] }
   0x6   :  { %v32_v4 = vsel %vm31_vm0, %v29_v2, 0.0  ;;  %v35_v6 = vsel %vm31_vm0, %v30_v5, 0.0  ;;  %237 = vmatpush.bf16.msra.mxu3 %v549_v22  ;;  %v541_v33 = vor.u32 %v618_v30, %v538_v31  ;;  %v608_v37 = vld [vmem:[%s900_s2 + $0x14] sm:$0xf]  ;;  %v495_v38 = vor.u32 %v609_v36, %v494_v35  ;;  %v496_v39 = vld [vmem:[%s900_s2 + $0x18] sm:$0xf0] }
   0x7   :  { %33 = vadd.xlane.f32.xlu0 %v32_v4  ;;  %v642_v8 = vpop.eup %641  ;;  %v616_v40 = vld [vmem:[%s901_s3 + $0x14] sm:$0xf]  ;;  %v530_v41 = vld [vmem:[%s901_s3 + $0x18] sm:$0xf0]  ;;  %v499_v42 = vor.u32 %v608_v37, %v496_v39  ;;  %v486_v44 = vld [vmem:[%s900_s2] sm:$0xf] }
   0x8   :  { %v39_v9 = vmul.f32 64.0, %v642_v8  ;;  %vm43_vm1 = vweird.f32 %v642_v8  ;;  %148 = vmatpush.bf16.msra.mxu2 %v503_v28  ;;  %v533_v43 = vor.u32 %v616_v40, %v530_v41  ;;  %v607_v45 = vld [vmem:[%s900_s2 + $0x4] sm:$0xf0]  ;;  %v606_v46 = vld [vmem:[%s900_s2 + $0x4] sm:$0xf]  ;;  %v633_v29 = vld [vmem:[%s902_s4 + $0x58] sm:$0xff] }
   0x9   :  { %162 = vmatpush.bf16.msra.mxu1 %v507_v32  ;;  %v487_v47 = vor.u32 %v607_v45, %v486_v44  ;;  %v488_v48 = vld [vmem:[%s900_s2 + $0x8] sm:$0xf0]  ;;  %v614_v49 = vld [vmem:[%s901_s3 + $0x4] sm:$0xf]  ;;  %v544_v58 = vld [vmem:[%s901_s3 + $0x30] sm:$0xf] }
   0xa   :  { %v40_v10 = vsub.f32 1.0, %v39_v9  ;;  %238 = vmatpush.bf16.msra.mxu3 %v541_v33  ;;  %v522_v50 = vld [vmem:[%s901_s3 + $0x8] sm:$0xf0]  ;;  %v491_v52 = vor.u32 %v606_v46, %v488_v48  ;;  %v621_v59 = vld [vmem:[%s901_s3 + $0x34] sm:$0xf0]  ;;  %v626_v30 = vld [vmem:[%s902_s4 + $0x20] sm:$0xff] }
   0xb   :  { %v525_v53 = vor.u32 %v614_v49, %v522_v50  ;;  %v545_v61 = vor.u32 %v621_v59, %v544_v58  ;;  %v536_v62 = vld [vmem:[%s901_s3 + $0x20] sm:$0xf]  ;;  %v619_v63 = vld [vmem:[%s901_s3 + $0x24] sm:$0xf0]  ;;  %v528_v4 = vld [vmem:[%s901_s3 + $0x10] sm:$0xf] }
   0xc   :  { %v41_v11 = vmul.f32 %v642_v8, %v40_v10  ;;  %149 = vmatpush.bf16.msra.mxu2 %v495_v38  ;;  %v537_v2 = vor.u32 %v619_v63, %v536_v62  ;;  %v617_v5 = vld [vmem:[%s901_s3 + $0x14] sm:$0xf0]  ;;  %v615_v13 = vld [vmem:[%s901_s3 + $0x4] sm:$0xf0]  ;;  %v632_v32 = vld [vmem:[%s902_s4 + $0x50] sm:$0xff] }
   0xd   :  { %163 = vmatpush.bf16.msra.mxu1 %v499_v42  ;;  %v627_v28 = vld [vmem:[%s902_s4 + $0x28] sm:$0xff]  ;;  %v624_v37 = vld [vmem:[%s902_s4 + $0x10] sm:$0xff]  ;;  %v630_v40 = vld [vmem:[%s902_s4 + $0x40] sm:$0xff] }
   0xe   :  { %v42_v12 = vadd.f32 %v642_v8, %v41_v11  ;;  %239 = vmatpush.bf16.msra.mxu3 %v533_v43  ;;  %v529_v11 = vor.u32 %v617_v5, %v528_v4  ;;  %v631_v35 = vld [vmem:[%s902_s4 + $0x48] sm:$0xff]  ;;  %v622_v45 = vld [vmem:[%s902_s4] sm:$0xff] }
   0xf   :  { %36 = vadd.xlane.f32.xlu0 %v35_v6  ;;  %v623_v44 = vld [vmem:[%s902_s4 + $0x8] sm:$0xff] }
  0x10   :  { %v44_v20 = vsel %vm43_vm1, %v642_v8, %v42_v12  ;;  %150 = vmatpush.bf16.msra.mxu2 %v487_v47  ;;  %v640_v8 = vld [vmem:[%s899_s1] ss:$0 sm:$0xff] }
  0x11   :  { %164 = vmatpush.bf16.msra.mxu1 %v491_v52  ;;  %v520_v12 = vld [vmem:[%s901_s3] sm:$0xf] }
  0x12   :  { %240 = vmatpush.bf16.msra.mxu3 %v525_v53  ;;  %v521_v18 = vor.u32 %v615_v13, %v520_v12 }
  0x14   :  { %223 = vmatpush.bf16.msrb.mxu2 %v545_v61 }
  0x15   :  { %452 = vmatpush.bf16.msrb.mxu1 %v633_v29 }
  0x18   :  { %224 = vmatpush.bf16.msrb.mxu2 %v537_v2 }
  0x19   :  { %453 = vmatpush.bf16.msrb.mxu1 %v632_v32 }
  0x1c   :  { %225 = vmatpush.bf16.msrb.mxu2 %v529_v11 }
  0x1d   :  { %454 = vmatpush.bf16.msrb.mxu1 %v631_v35 }
  0x20   :  { %226 = vmatpush.bf16.msrb.mxu2 %v521_v18 }
  0x21   :  { %455 = vmatpush.bf16.msrb.mxu1 %v630_v40 }
  0x7a   :  { %v34_v23 = vpop.xlane.xlu0 %33 }
  0x7b   :  { %v45_v27 = vmul.f32 %v44_v20, %v34_v23 }
  0x7d   :  { %v47_v34 = vadd.f32 1e-05, %v45_v27  ;;  %v629_v27 = vld [vmem:[%s902_s4 + $0x38] sm:$0xff] }
  0x7e   :  { %434 = vmatpush.bf16.msra.mxu0 %v629_v27 }
  0x7f   :  { %643 = vrsqrt.f32 %v47_v34  ;;  %vm55_vm3 = vweird.f32 %v47_v34 }
  0x82   :  { %v37_v51 = vpop.xlane.xlu0 %36 }
  0x83   :  { %v46_v54 = vmul.f32 %v44_v20, %v37_v51 }
  0x85   :  { %v644_v55 = vpop.eup %643  ;;  %v48_v56 = vadd.f32 1e-05, %v46_v54 }
  0x86   :  { %v50_v57 = vmul.f32 %v644_v55, %v47_v34  ;;  %vm56_vm2 = vweird.f32 %v644_v55  ;;  %v625_v34 = vld [vmem:[%s902_s4 + $0x18] sm:$0xff] }
  0x87   :  { %645 = vrsqrt.f32 %v48_v56  ;;  %vm57_vm4 = vmor %vm55_vm3, %vm56_vm2  ;;  %vm65_vm7 = vweird.f32 %v48_v56 }
  0x88   :  { %v51_v60 = vmul.f32 %v644_v55, %v50_v57 }
  0x8a   :  { %v52_v0 = vmul.f32 0.5, %v51_v60 }
  0x8c   :  { %v53_v6 = vsub.f32 1.5, %v52_v0 }
  0x8d   :  { %v646_v7 = vpop.eup %645 }
  0x8e   :  { %v54_v9 = vmul.f32 %v644_v55, %v53_v6  ;;  %v60_v10 = vmul.f32 %v646_v7, %v48_v56  ;;  %vm66_vm6 = vweird.f32 %v646_v7 }
  0x8f   :  { %vm67_vm8 = vmor %vm65_vm7, %vm66_vm6 }
  0x90   :  { %v58_v14 = vsel %vm57_vm4, %v644_v55, %v54_v9  ;;  %v61_v15 = vmul.f32 %v646_v7, %v60_v10 }
  0x91   :  { %v69_v16 = vmul.f32 %v698_v1, %v58_v14 }
  0x92   :  { %v62_v17 = vmul.f32 0.5, %v61_v15 }
  0x93   :  { %v75_v19 = vmul.f32 %v640_v8, %v69_v16 }
  0x94   :  { %v63_v20 = vsub.f32 1.5, %v62_v17 }
  0x95   :  { %v77_v21 = vpack.c.bf16 %v75_v19, %v75_v19 }
  0x96   :  { %v64_v22 = vmul.f32 %v646_v7, %v63_v20 }
  0x97   :  { %80 = vst.msk [vmem:[#allocation3] sm:$0xf] %vm79_vm5, %v77_v21 }
  0x98   :  { %v68_v23 = vsel %vm67_vm8, %v646_v7, %v64_v22 }
  0x99   :  { %v70_v24 = vmul.f32 %v702_v3, %v68_v23  ;;  %v628_v3 = vld [vmem:[%s902_s4 + $0x30] sm:$0xff] }
  0x9a   :  { %435 = vmatpush.bf16.msra.mxu0 %v628_v3 }
  0x9b   :  { %v76_v25 = vmul.f32 %v640_v8, %v70_v24 }
  0x9d   :  { %v78_v26 = vpack.c.bf16 %v76_v25, %v76_v25 }
  0x9e   :  { %436 = vmatpush.bf16.msra.mxu0 %v627_v28 }
  0x9f   :  { %81 = vst.msk [vmem:[#allocation3 + $0x4] sm:$0xf] %vm79_vm5, %v78_v26 }
  0xa2   :  { %437 = vmatpush.bf16.msra.mxu0 %v626_v30 }
  0xa6   :  { %v605_v1 = vld [vmem:[#allocation3] sm:$0xff]  ;;  %438 = vmatpush.bf16.msra.mxu0 %v625_v34 }
  0xa7   :  { %516 = vmatmul.msk.bf16.vlgmr.msra.gmra.mxu2 %vm31_vm0, %v605_v1  ;;  %517 = vmatmul.msk.bf16.vlgmr.msra.gmra.mxu1 %vm31_vm0, %v605_v1 }
  0xa8   :  { %551 = vmatmul.msk.bf16.vlgmr.msra.gmra.mxu3 %vm31_vm0, %v605_v1 }
  0xaa   :  { %439 = vmatpush.bf16.msra.mxu0 %v624_v37 }
  0xae   :  { %440 = vmatpush.bf16.msra.mxu0 %v623_v44 }
  0xb2   :  { %441 = vmatpush.bf16.msra.mxu0 %v622_v45 }
  0xb7   :  { %550 = vmatmul.msk.bf16.vlgmr.msrb.gmra.mxu2 %vm31_vm0, %v605_v1 }
 0x124   :  { %v830_v31 = vpop.f32.mrf.mxu1 }
 0x125   :  { %v553_v33 = vmul.f32 -1.442695, %v830_v31 }
 0x127   :  { %647 = vpow2.f32 %v553_v33 }
 0x12a   :  { %v842_v36 = vpop.f32.mrf.mxu2 }
 0x12b   :  { %v552_v38 = vmul.f32 -1.442695, %v842_v36  ;;  %v242_v6 = vpop.f32.mrf.mxu3 }
 0x12c   :  { %v848_v39 = vpop.f32.mrf.mxu1 }
 0x12d   :  { %v648_v41 = vpop.eup %647  ;;  %649 = vpow2.f32 %v552_v38  ;;  %v555_v42 = vmul.f32 -1.442695, %v848_v39 }
 0x12e   :  { %v260_v43 = vadd.f32 1.0, %v648_v41 }
 0x12f   :  { %651 = vpow2.f32 %v555_v42 }
 0x130   :  { %653 = vrcp.f32 %v260_v43  ;;  %v289_v61 = vand.u32 2147483648, %v260_v43  ;;  %vm283_vm10 = vweird.f32 %v260_v43  ;;  %v287_v0 = vand.u32 2147483647, %v260_v43 }
 0x132   :  { %v860_v46 = vpop.f32.mrf.mxu2  ;;  %v290_v8 = vor.u32 1.1754944e-38, %v289_v61  ;;  %vm288_vm13 = vcmp.eq.f32.partialorder %v287_v0, 8.507059e+37 }
 0x133   :  { %v650_v47 = vpop.eup %649  ;;  %v554_v48 = vmul.f32 -1.442695, %v860_v46  ;;  %v244_v35 = vpop.f32.mrf.mxu3 }
 0x134   :  { %v259_v49 = vadd.f32 1.0, %v650_v47 }
 0x135   :  { %v652_v50 = vpop.eup %651  ;;  %655 = vpow2.f32 %v554_v48 }
 0x136   :  { %v654_v51 = vpop.eup %653  ;;  %657 = vrcp.f32 %v259_v49  ;;  %v262_v53 = vadd.f32 1.0, %v652_v50  ;;  %v272_v9 = vand.u32 2147483647, %v259_v49  ;;  %v274_v12 = vand.u32 2147483648, %v259_v49 }
 0x137   :  { %v279_v52 = vmul.f32 %v654_v51, %v260_v43  ;;  %vm284_vm9 = vweird.f32 %v654_v51  ;;  %vm268_vm15 = vweird.f32 %v259_v49 }
 0x138   :  { %659 = vrcp.f32 %v262_v53  ;;  %vm863_vm11 = vmor %vm283_vm10, %vm284_vm9  ;;  %v319_v13 = vand.u32 2147483648, %v262_v53  ;;  %v317_v16 = vand.u32 2147483647, %v262_v53  ;;  %vm873_vm2 = vcmp.eq.f32.partialorder %v272_v9, 8.507059e+37 }
 0x139   :  { %v280_v54 = vsub.f32 1.0, %v279_v52  ;;  %vm313_vm3 = vweird.f32 %v262_v53  ;;  %v275_v24 = vor.u32 1.1754944e-38, %v274_v12 }
 0x13a   :  { %v228_v22 = vpop.f32.mrf.mxu2  ;;  %v320_v25 = vor.u32 1.1754944e-38, %v319_v13  ;;  %vm318_vm6 = vcmp.eq.f32.partialorder %v317_v16, 8.507059e+37 }
 0x13b   :  { %v656_v55 = vpop.eup %655  ;;  %v281_v56 = vmul.f32 %v654_v51, %v280_v54 }
 0x13c   :  { %v658_v57 = vpop.eup %657  ;;  %v261_v58 = vadd.f32 1.0, %v656_v55 }
 0x13d   :  { %v264_v59 = vmul.f32 %v658_v57, %v259_v49  ;;  %v282_v60 = vadd.f32 %v654_v51, %v281_v56  ;;  %vm269_vm12 = vweird.f32 %v658_v57  ;;  %v664_v49 = vmov 0.0  }
 0x13e   :  { %661 = vrcp.f32 %v261_v58  ;;  %v660_v62 = vpop.eup %659  ;;  %vm869_vm1 = vmor %vm268_vm15, %vm269_vm12  ;;  %v304_v3 = vand.u32 2147483648, %v261_v58  ;;  %v302_v30 = vand.u32 2147483647, %v261_v58  ;;  %vm298_vm8 = vweird.f32 %v261_v58  ;;  %82 = vst.msk [vmem:[#allocation2] sm:$0xff] %vm31_vm0, %v664_v49 }
 0x13f   :  { %v265_v63 = vsub.f32 1.0, %v264_v59  ;;  %v309_v2 = vmul.f32 %v660_v62, %v262_v53  ;;  %v286_v7 = vsel %vm863_vm11, %v654_v51, %v282_v60  ;;  %vm314_vm14 = vweird.f32 %v660_v62  ;;  %83 = vst.msk [vmem:[#allocation2 + $0x8] sm:$0xff] %vm31_vm0, %v664_v49 }
 0x140   :  { %v291_v17 = vsel %vm288_vm13, %v290_v8, %v286_v7  ;;  %vm315_vm4 = vmor %vm313_vm3, %vm314_vm14  ;;  %v305_v38 = vor.u32 1.1754944e-38, %v304_v3  ;;  %vm303_vm10 = vcmp.eq.f32.partialorder %v302_v30, 8.507059e+37 }
 0x141   :  { %v266_v5 = vmul.f32 %v658_v57, %v265_v63  ;;  %v310_v10 = vsub.f32 1.0, %v309_v2  ;;  %v324_v1 = vmul.f32 %v291_v17, %v830_v31 }
 0x142   :  { %v230_v45 = vpop.f32.mrf.mxu2 }
 0x143   :  { %v267_v11 = vadd.f32 %v658_v57, %v266_v5  ;;  %v311_v15 = vmul.f32 %v660_v62, %v310_v10  ;;  %v328_v37 = vmul.f32 %v324_v1, %v242_v6 }
 0x144   :  { %v662_v14 = vpop.eup %661 }
 0x145   :  { %v294_v18 = vmul.f32 %v662_v14, %v261_v58  ;;  %v312_v21 = vadd.f32 %v660_v62, %v311_v15  ;;  %v271_v23 = vsel %vm869_vm1, %v658_v57, %v267_v11  ;;  %vm299_vm7 = vweird.f32 %v662_v14 }
 0x146   :  { %v276_v32 = vsel %vm873_vm2, %v275_v24, %v271_v23  ;;  %vm300_vm9 = vmor %vm298_vm8, %vm299_vm7  ;;  %v334_v54 = vld [vmem:[#allocation2 + $0x8] sm:$0xff] }
 0x147   :  { %v295_v26 = vsub.f32 1.0, %v294_v18  ;;  %v316_v27 = vsel %vm315_vm4, %v660_v62, %v312_v21  ;;  %v323_v31 = vmul.f32 %v276_v32, %v842_v36  ;;  %v333_v36 = vld [vmem:[#allocation2] sm:$0xff] }
 0x148   :  { %v321_v28 = vsel %vm318_vm6, %v320_v25, %v316_v27 }
 0x149   :  { %v296_v29 = vmul.f32 %v662_v14, %v295_v26  ;;  %v326_v33 = vmul.f32 %v321_v28, %v848_v39  ;;  %v327_v47 = vmul.f32 %v323_v31, %v228_v22 }
 0x14b   :  { %v297_v34 = vadd.f32 %v662_v14, %v296_v29  ;;  %v330_v40 = vmul.f32 %v326_v33, %v244_v35 }
 0x14d   :  { %v301_v41 = vsel %vm300_vm9, %v662_v14, %v297_v34  ;;  %v332_v43 = vpack.c.bf16 %v330_v40, %v328_v37 }
 0x14e   :  { %v306_v42 = vsel %vm303_vm10, %v305_v38, %v301_v41 }
 0x14f   :  { %v325_v44 = vmul.f32 %v306_v42, %v860_v46  ;;  %604 = vmatmul.msk.bf16.vlgmr.msrb.gmra.mxu1 %vm31_vm0, %v332_v43 }
 0x151   :  { %v329_v39 = vmul.f32 %v325_v44, %v230_v45 }
 0x153   :  { %v331_v48 = vpack.c.bf16 %v329_v39, %v327_v47 }
 0x155   :  { %442 = vmatmul.bf16.vlgmr.msra.gmra.mxu0 %v331_v48 }
 0x1cc   :  { %v457_v50 = vpop.f32.mrf.mxu1 }
 0x1d2   :  { %v443_v51 = vpop.f32.mrf.mxu0 }
 0x1d3   :  { %v458_v52 = vadd.f32 %v457_v50, %v443_v51 }
 0x1d4   :  { %v459_v46 = vpop.f32.mrf.mxu1 }
 0x1d5   :  { %v462_v53 = vadd.f32 %v458_v52, %v333_v36 }
 0x1d7   :  { %464 = vst.msk [vmem:[#allocation2] sm:$0xff] %vm31_vm0, %v462_v53 }
 0x1da   :  { %v445_v55 = vpop.f32.mrf.mxu0 }
 0x1db   :  { %v460_v56 = vadd.f32 %v459_v46, %v445_v55 }
 0x1dd   :  { %v463_v57 = vadd.f32 %v460_v56, %v334_v54 }
 0x1de   :  { %v469_v58 = vld [vmem:[#allocation2] sm:$0xff] }
 0x1df   :  { %v471_v59 = vpack.c.bf16 %v469_v58, %v469_v58  ;;  %465 = vst.msk [vmem:[#allocation2 + $0x8] sm:$0xff] %vm31_vm0, %v463_v57 }
 0x1e1   :  { %474 = vst.msk [vmem:[%s903_s5] sm:$0xf] %vm79_vm5, %v471_v59 }
 0x1e6   :  { %v470_v60 = vld [vmem:[#allocation2 + $0x8] sm:$0xff] }
 0x1e7   :  { %v472_v61 = vpack.c.bf16 %v470_v60, %v470_v60 }
 0x1e9   :  { %475 = vst.msk [vmem:[%s903_s5 + $0x4] sm:$0xf] %vm79_vm5, %v472_v61 }

// kernel: _forward_impl.17
= control target key start
LH: loop header
LB: loop body
LE: loop exit
PB: predicated region body
PF: predicated region fallthrough
CT: control target
= control target key end

     0   :  { %s269_s0 = inlined_call_operand.vmem [shape: bf16[16,64], index: 0, kind: input, shape index: {}]   ;;  %s270_s1 = inlined_call_operand.vmem [shape: f32[1,64], index: 1, kind: input, shape index: {}]   ;;  %s271_s2 = inlined_call_operand.vmem [shape: bf16[64,128], index: 2, kind: input, shape index: {}]   ;;  %s272_s3 = inlined_call_operand.hbm [shape: f32[16,128], index: 3, kind: output, shape index: {}]  }
   0x1   :  { %v181_v0 = vld [vmem:[%s269_s0] sm:$0xff]  }
   0x2   :  { %v182_v1 = vunpack.c.l.bf16 %v181_v0 }
   0x3   :  { %8 = vsyncpa [#allocation4], 0  ;;  %vm26_vm0 = vcmask 523264   ;;  %v183_v3 = vunpack.c.h.bf16 %v181_v0  ;;  %v221_v7 = vmov 64.0   ;;  %v179_v13 = vld [vmem:[%s271_s2 + $0x18] sm:$0xff]  ;;  %v178_v17 = vld [vmem:[%s271_s2 + $0x10] sm:$0xff] }
   0x4   :  { %v24_v2 = vmul.f32 %v182_v1, %v182_v1  ;;  %189 = vrcp.f32 %v221_v7  ;;  %124 = vmatpush.bf16.msra.mxu0 %v179_v13  ;;  %v177_v19 = vld [vmem:[%s271_s2 + $0x8] sm:$0xff]  ;;  %v176_v20 = vld [vmem:[%s271_s2] sm:$0xff]  ;;  %vm74_vm5 = vcmask 519168   ;;  %s142_s25 = sshll.u32 %s272_s3, 4  ;;  %s223_s26 = smov 128   ;;  %s143_s25 = int_to_ptr.hbm [resolvable:$true] %s142_s25 }
   0x5   :  { %v25_v5 = vmul.f32 %v183_v3, %v183_v3  ;;  %v188_v32 = vld [vmem:[%s270_s1] ss:$0 sm:$0xff]  ;;  %s222_s1 = smov [#allocation3]   ;;  %s224_s27 = smov 8  }
   0x6   :  { %v27_v4 = vsel %vm26_vm0, %v24_v2, 0.0  ;;  %s140_s2 = sshll.u32 %s222_s1, 4  ;;  %s141_s2 = int_to_ptr.vmem [resolvable:$true] %s140_s2 }
   0x7   :  { %28 = vadd.xlane.f32.xlu0 %v27_v4  ;;  %v30_v6 = vsel %vm26_vm0, %v25_v5, 0.0 }
   0x8   :  { %125 = vmatpush.bf16.msra.mxu0 %v178_v17 }
   0xa   :  { %v190_v8 = vpop.eup %189 }
   0xb   :  { %v34_v9 = vmul.f32 64.0, %v190_v8  ;;  %vm38_vm1 = vweird.f32 %v190_v8 }
   0xc   :  { %126 = vmatpush.bf16.msra.mxu0 %v177_v19 }
   0xd   :  { %v35_v10 = vsub.f32 1.0, %v34_v9 }
   0xf   :  { %31 = vadd.xlane.f32.xlu0 %v30_v6  ;;  %v36_v11 = vmul.f32 %v190_v8, %v35_v10 }
  0x10   :  { %127 = vmatpush.bf16.msra.mxu0 %v176_v20 }
  0x11   :  { %v37_v12 = vadd.f32 %v190_v8, %v36_v11 }
  0x13   :  { %v39_v14 = vsel %vm38_vm1, %v190_v8, %v37_v12 }
  0x7a   :  { %v29_v15 = vpop.xlane.xlu0 %28 }
  0x7b   :  { %v40_v16 = vmul.f32 %v39_v14, %v29_v15 }
  0x7d   :  { %v42_v18 = vadd.f32 1e-05, %v40_v16 }
  0x7f   :  { %191 = vrsqrt.f32 %v42_v18  ;;  %vm50_vm3 = vweird.f32 %v42_v18 }
  0x82   :  { %v32_v21 = vpop.xlane.xlu0 %31 }
  0x83   :  { %v41_v22 = vmul.f32 %v39_v14, %v32_v21 }
  0x85   :  { %v192_v23 = vpop.eup %191  ;;  %v43_v24 = vadd.f32 1e-05, %v41_v22 }
  0x86   :  { %v45_v25 = vmul.f32 %v192_v23, %v42_v18  ;;  %vm51_vm2 = vweird.f32 %v192_v23 }
  0x87   :  { %193 = vrsqrt.f32 %v43_v24  ;;  %vm52_vm4 = vmor %vm50_vm3, %vm51_vm2  ;;  %vm60_vm7 = vweird.f32 %v43_v24 }
  0x88   :  { %v46_v26 = vmul.f32 %v192_v23, %v45_v25 }
  0x8a   :  { %v47_v27 = vmul.f32 0.5, %v46_v26 }
  0x8c   :  { %v48_v28 = vsub.f32 1.5, %v47_v27 }
  0x8d   :  { %v194_v29 = vpop.eup %193 }
  0x8e   :  { %v49_v30 = vmul.f32 %v192_v23, %v48_v28  ;;  %v55_v31 = vmul.f32 %v194_v29, %v43_v24  ;;  %vm61_vm6 = vweird.f32 %v194_v29 }
  0x8f   :  { %vm62_vm8 = vmor %vm60_vm7, %vm61_vm6 }
  0x90   :  { %v53_v33 = vsel %vm52_vm4, %v192_v23, %v49_v30  ;;  %v56_v34 = vmul.f32 %v194_v29, %v55_v31 }
  0x91   :  { %v64_v35 = vmul.f32 %v182_v1, %v53_v33 }
  0x92   :  { %v57_v36 = vmul.f32 0.5, %v56_v34 }
  0x93   :  { %v70_v37 = vmul.f32 %v188_v32, %v64_v35 }
  0x94   :  { %v58_v38 = vsub.f32 1.5, %v57_v36 }
  0x95   :  { %v72_v39 = vpack.c.bf16 %v70_v37, %v70_v37 }
  0x96   :  { %v59_v40 = vmul.f32 %v194_v29, %v58_v38 }
  0x97   :  { %75 = vst.msk [vmem:[#allocation2] sm:$0xf] %vm74_vm5, %v72_v39 }
  0x98   :  { %v63_v41 = vsel %vm62_vm8, %v194_v29, %v59_v40 }
  0x99   :  { %v65_v42 = vmul.f32 %v183_v3, %v63_v41 }
  0x9b   :  { %v71_v43 = vmul.f32 %v188_v32, %v65_v42 }
  0x9d   :  { %v73_v44 = vpack.c.bf16 %v71_v43, %v71_v43 }
  0x9f   :  { %76 = vst.msk [vmem:[#allocation2 + $0x4] sm:$0xf] %vm74_vm5, %v73_v44 }
  0xa6   :  { %v175_v45 = vld [vmem:[#allocation2] sm:$0xff] }
  0xa7   :  { %174 = vmatmul.msk.bf16.vlgmr.msra.gmra.mxu0 %vm26_vm0, %v175_v45 }
 0x124   :  { %v129_v46 = vpop.f32.mrf.mxu0 }
 0x125   :  { %134 = vst [vmem:[#allocation3] sm:$0xff] %v129_v46 }
 0x12c   :  { %v131_v47 = vpop.f32.mrf.mxu0 }
 0x12d   :  { %135 = vst [vmem:[#allocation3 + $0x8] sm:$0xff] %v131_v47 }
 0x12e   :  { %148 = dma.vmem_to_hbm [thread:$0]  %s141_s2, 256, %s143_s25, [#allocation4], %s223_s26, %s223_s26, %s224_s27  }
 0x12f   :  { %219 = dma.done.wait [#allocation4], 256  }
 0x130   :  { %220 = vsyncadd [#allocation4], 4294967040 }
 0x131   :  { %153 = vsyncpa [#allocation4], 1 }

</bundles_post_ra>
